<compile_context>
chip_gen: v5e
topology: v5e:2x2
jax: 0.10.0
libtpu: 0.0.40
codegen_flags: <defaults>
</compile_context>

<pallas_src>
import functools

import jax
import jax.numpy as jnp
from jax.experimental import pallas as pl
from jax.experimental.pallas import tpu as pltpu

_BN_EPS = 1e-5
_VMEM_LIMIT = 40 * 1024 * 1024      # safe on v7x (64 MiB phys) and v5e/v6e
_W_TILE_BYTES = 8 * 1024 * 1024     # cap on the 3x3 weight Cout tile


def _round_up(v, m):
    return ((v + m - 1) // m) * m


def _apply_act(y, act):
    if act == "relu6":
        return jnp.minimum(jnp.maximum(y, 0.0), 6.0)
    if act == "relu":
        return jnp.maximum(y, 0.0)
    if act == "tanh":
        return jnp.tanh(y)
    return y


# ---------------------------------------------------------------------------
# Kernel 1: direct 3x3 stride-1 conv + fused BN(scale/bias) + activation.
#   grid = (row-strips, Cout-tiles).  One halo-inclusive activation strip
#   (TR+2, Wp+2, C) is resident per row-strip; 9 tap matmuls with M = TR*Wp
#   accumulate into a VMEM f32 scratch; fused scale/bias/act epilogue.
# ---------------------------------------------------------------------------
def _conv3x3_kernel(x_ref, w_ref, s_ref, b_ref, o_ref, acc_ref, *, act, tr, wp):
    c = x_ref.shape[2]
    first = True
    for dy in range(3):
        for dx in range(3):
            # dy slice is along the untiled leading dim (free); dx slice is a
            # sublane shift handled by Mosaic.  TODO(synk): folding the three
            # dx taps into one K=3C matmul would cut MXU pushes further.
            xs = x_ref[dy:dy + tr, dx:dx + wp, :].reshape(tr * wp, c)
            p = jnp.dot(xs, w_ref[dy, dx], preferred_element_type=jnp.float32)
            if first:
                acc_ref[...] = p
                first = False
            else:
                acc_ref[...] += p
    y = acc_ref[...] * s_ref[...] + b_ref[...]
    o_ref[...] = _apply_act(y, act).astype(o_ref.dtype)


def _pick_tr(h, wp, c, target=1024):
    """Rows per grid step: divides h, strip fits comfortably in VMEM."""
    cands = [t for t in range(1, h + 1) if h % t == 0]

    def key(t):
        strip_bytes = (t + 2) * (wp + 2) * c * 2
        return (strip_bytes > (8 << 20), abs(t * wp - target))

    return min(cands, key=key)


def _pick_tn(c, opad):
    """Largest 128-multiple divisor of opad keeping the weight tile bounded."""
    for tn in range(opad, 127, -128):
        if opad % tn == 0 and 3 * 3 * c * tn * 2 <= _W_TILE_BYTES:
            return tn
    return 128


@functools.partial(jax.jit, static_argnames=("act",))
def conv3x3_bn_act(x, w, scale, bias, *, act):
    """x: (N,H,W,C) bf16; w: (3,3,C,O) bf16; scale/bias: (O,) f32. stride1/pad1."""
    n, h, wd, c = x.shape
    o = w.shape[-1]

    # Lane-dense output: always pad Cout to a multiple of 128.
    opad = _round_up(o, 128)
    if opad != o:
        w = jnp.pad(w, ((0, 0), (0, 0), (0, 0), (0, opad - o)))
        scale = jnp.pad(scale, (0, opad - o))
        bias = jnp.pad(bias, (0, opad - o))

    # Pad W up to a multiple of 8 so row-merging reshapes are sublane-aligned.
    wp = _round_up(wd, 8)
    tn = _pick_tn(c, opad)
    tr = _pick_tr(h, wp, c)

    # Spatial pad (+ extra right columns up to wp) and halo-inclusive strips:
    # strip t = padded rows [t*tr, t*tr + tr + 2).  Built with 3 strided slices.
    xp = jnp.pad(x, ((0, 0), (1, 1), (1, 1 + wp - wd), (0, 0)))  # (n,h+2,wp+2,c)
    body = xp[:, :h].reshape(n, h // tr, tr, wp + 2, c)
    halo1 = xp[:, tr:h + 1:tr][:, :, None]
    halo2 = xp[:, tr + 1:h + 2:tr][:, :, None]
    xs = jnp.concatenate([body, halo1, halo2], axis=2)
    xs = xs.reshape(n * (h // tr), tr + 2, wp + 2, c)

    row_tiles = n * h // tr
    grid = (row_tiles, opad // tn)
    cost = pl.CostEstimate(
        flops=2 * n * h * wp * 9 * c * opad,
        transcendentals=(n * h * wp * opad) if act == "tanh" else 0,
        bytes_accessed=(xs.size * 2                      # strips, read once
                        + row_tiles * 9 * c * opad * 2   # weights per row-strip
                        + n * h * wp * opad * 2          # output store
                        + 2 * opad * 4),
    )
    out = pl.pallas_call(
        functools.partial(_conv3x3_kernel, act=act, tr=tr, wp=wp),
        out_shape=jax.ShapeDtypeStruct((n * h * wp, opad), jnp.bfloat16),
        grid_spec=pltpu.PrefetchScalarGridSpec(
            num_scalar_prefetch=0,
            grid=grid,
            in_specs=[
                # activation strip: constant across the inner Cout axis -> resident
                pl.BlockSpec((None, tr + 2, wp + 2, c), lambda r, j: (r, 0, 0, 0)),
                pl.BlockSpec((3, 3, c, tn), lambda r, j: (0, 0, 0, j)),
                pl.BlockSpec((1, tn), lambda r, j: (0, j)),
                pl.BlockSpec((1, tn), lambda r, j: (0, j)),
            ],
            out_specs=pl.BlockSpec((tr * wp, tn), lambda r, j: (r, j)),
            scratch_shapes=[pltpu.VMEM((tr * wp, tn), jnp.float32)],
        ),
        compiler_params=pltpu.CompilerParams(
            dimension_semantics=("parallel", "arbitrary"),
            vmem_limit_bytes=_VMEM_LIMIT),
        cost_estimate=cost,
    )(xs, w,
      scale.reshape(1, -1).astype(jnp.float32),
      bias.reshape(1, -1).astype(jnp.float32))

    out = out.reshape(n, h, wp, opad)
    if wp != wd or opad != o:
        out = out[:, :, :wd, :o]
    return out


# ---------------------------------------------------------------------------
# Kernel 2: tiled matmul + fused scale/bias/act (1x1 transitions, stride-2 stem)
#   Single-K step (K <= ~1.3k in this net) -> no accumulator scratch, no
#   pl.when bookkeeping; weights resident across the M-tile grid axis.
# ---------------------------------------------------------------------------
def _matmul_kernel(x_ref, w_ref, s_ref, b_ref, o_ref, *, act):
    y = jnp.dot(x_ref[...], w_ref[...], preferred_element_type=jnp.float32)
    o_ref[...] = _apply_act(y * s_ref[...] + b_ref[...], act).astype(o_ref.dtype)


def _choose_m_tiling(m):
    """Returns (padded_m, tile_m); never produces an unbounded tile."""
    if m <= 1024:
        mp = _round_up(m, 8)
        return mp, mp
    for t in (1024, 512, 256, 128):
        if m % t == 0:
            return m, t
    return _round_up(m, 256), 256


def matmul_scale_bias_act(x, w, scale, bias, *, act):
    """(M,K)bf16 @ (K,N)bf16 -> (M,N)bf16 with per-column scale/bias + act."""
    m, k = x.shape
    n = w.shape[1]
    mpad, tm = _choose_m_tiling(m)
    if mpad != m:
        x = jnp.pad(x, ((0, mpad - m), (0, 0)))
    cost = pl.CostEstimate(
        flops=2 * mpad * k * n,
        transcendentals=mpad * n if act == "tanh" else 0,
        bytes_accessed=mpad * k * 2 + k * n * 2 + mpad * n * 2 + 8 * n,
    )
    out = pl.pallas_call(
        functools.partial(_matmul_kernel, act=act),
        out_shape=jax.ShapeDtypeStruct((mpad, n), jnp.bfloat16),
        grid_spec=pltpu.PrefetchScalarGridSpec(
            num_scalar_prefetch=0,
            grid=(mpad // tm,),
            in_specs=[
                pl.BlockSpec((tm, k), lambda i: (i, 0)),
                pl.BlockSpec((k, n), lambda i: (0, 0)),
                pl.BlockSpec((1, n), lambda i: (0, 0)),
                pl.BlockSpec((1, n), lambda i: (0, 0)),
            ],
            out_specs=pl.BlockSpec((tm, n), lambda i: (i, 0)),
        ),
        compiler_params=pltpu.CompilerParams(
            dimension_semantics=("parallel",),
            vmem_limit_bytes=_VMEM_LIMIT),
        cost_estimate=cost,
    )(x, w, scale.reshape(1, n).astype(jnp.float32),
      bias.reshape(1, n).astype(jnp.float32))
    if mpad != m:
        out = out[:m]
    return out


@functools.partial(jax.jit, static_argnames=("act",))
def conv1x1_bn_act(x, w, scale, bias, *, act):
    n, h, wd, c = x.shape
    o = w.shape[-1]
    y = matmul_scale_bias_act(x.reshape(n * h * wd, c), w.reshape(c, o),
                              scale, bias, act=act)
    return y.reshape(n, h, wd, o)


@functools.partial(jax.jit, static_argnames=("act",))
def conv3x3_s2_bn_act(x, w, scale, bias, *, act):
    # Stride-2 stem conv only; the im2col here is tiny (3 input channels).
    n, h, wd, c = x.shape
    o = w.shape[-1]
    ho, wo = (h - 1) // 2 + 1, (wd - 1) // 2 + 1
    xp = jnp.pad(x, ((0, 0), (1, 1), (1, 1), (0, 0)))
    slices = [xp[:, dy:dy + 2 * ho:2, dx:dx + 2 * wo:2, :]
              for dy in range(3) for dx in range(3)]
    cols = jnp.concatenate(slices, axis=-1).reshape(n * ho * wo, 9 * c)
    y = matmul_scale_bias_act(cols, w.reshape(9 * c, o), scale, bias, act=act)
    return y.reshape(n, ho, wo, o)


def conv_apply(x, p):
    if p["k"] == 1:
        return conv1x1_bn_act(x, p["w"], p["scale"], p["bias"], act=p["act"])
    if p["stride"] == 2:
        return conv3x3_s2_bn_act(x, p["w"], p["scale"], p["bias"], act=p["act"])
    return conv3x3_bn_act(x, p["w"], p["scale"], p["bias"], act=p["act"])


# ---------------------------------------------------------------------------
# Pooling / resize glue (plain JAX, no gathers)
# ---------------------------------------------------------------------------
@functools.partial(jax.jit, static_argnames=("k", "stride", "pad"))
def maxpool2d(x, *, k, stride, pad):
    n, h, w, c = x.shape
    if pad > 0:
        x = jnp.pad(x, ((0, 0), (pad, pad), (pad, pad), (0, 0)),
                    constant_values=-jnp.inf)
    hp, wp = h + 2 * pad, w + 2 * pad
    ho = (hp - k) // stride + 1
    wo = (wp - k) // stride + 1
    out = None
    for dy in range(k):
        for dx in range(k):
            s = x[:, dy:dy + stride * ho:stride, dx:dx + stride * wo:stride, :]
            out = s if out is None else jnp.maximum(out, s)
    return out


def _interp_matrix(in_size, out_size, align_corners):
    if align_corners:
        if in_size == 1 or out_size == 1:
            src = jnp.zeros((out_size,), jnp.float32)
        else:
            src = jnp.arange(out_size, dtype=jnp.float32) * (
                (in_size - 1) / (out_size - 1))
    else:
        src = (jnp.arange(out_size, dtype=jnp.float32) + 0.5) * (
            in_size / out_size) - 0.5
        src = jnp.clip(src, 0.0, in_size - 1)
    i0 = jnp.floor(src).astype(jnp.int32)
    i1 = jnp.minimum(i0 + 1, in_size - 1)
    f = src - i0.astype(jnp.float32)
    return (jax.nn.one_hot(i0, in_size, dtype=jnp.float32) * (1.0 - f)[:, None]
            + jax.nn.one_hot(i1, in_size, dtype=jnp.float32) * f[:, None])


@functools.partial(jax.jit, static_argnames=("out_h", "out_w", "align_corners"))
def bilinear_resize(x, *, out_h, out_w, align_corners):
    n, h, w, c = x.shape
    ah = _interp_matrix(h, out_h, align_corners)
    aw = _interp_matrix(w, out_w, align_corners)
    y = jnp.einsum("oh,nhwc->nowc", ah, x.astype(jnp.float32))
    y = jnp.einsum("pw,nowc->nopc", aw, y)
    return y.astype(x.dtype)


# ---------------------------------------------------------------------------
# Parameter construction (deterministic, synthetic)
# ---------------------------------------------------------------------------
def conv_layer_params(key, cin, cout, kernel=3, stride=1, act="relu6",
                      with_bn=True):
    k1, k2, k3, k4, k5 = jax.random.split(key, 5)
    fan_in = cin * kernel * kernel
    w = (jax.random.normal(k1, (kernel, kernel, cin, cout), jnp.float32)
         * (1.0 / jnp.sqrt(jnp.float32(fan_in)))).astype(jnp.bfloat16)
    if with_bn:
        gamma = 1.0 + 0.1 * jax.random.normal(k2, (cout,), jnp.float32)
        beta = 0.05 * jax.random.normal(k3, (cout,), jnp.float32)
        rmean = 0.05 * jax.random.normal(k4, (cout,), jnp.float32)
        rvar = 1.0 + 0.1 * jax.random.uniform(k5, (cout,), jnp.float32)
        scale = gamma / jnp.sqrt(rvar + _BN_EPS)
        bias = beta - rmean * scale
    else:
        scale = jnp.ones((cout,), jnp.float32)
        bias = jnp.zeros((cout,), jnp.float32)
    return dict(w=w, scale=scale, bias=bias, k=kernel, stride=stride, act=act)


def get_link(layer, base_ch, growth_rate, grmul):
    if layer == 0:
        return base_ch, 0, []
    out_channels = growth_rate
    link = []
    for i in range(10):
        dv = 2 ** i
        if layer % dv == 0:
            kk = layer - dv
            link.append(kk)
            if i > 0:
                out_channels *= grmul
    out_channels = int(int(out_channels + 1) / 2) * 2
    in_channels = 0
    for i in link:
        ch, _, _ = get_link(i, base_ch, growth_rate, grmul)
        in_channels += ch
    return out_channels, in_channels, link


def hard_block_params(key, in_channels, gr, grmul, n_layers):
    keys = jax.random.split(key, n_layers)
    links, layers = [], []
    out_ch_total = 0
    for i in range(n_layers):
        outch, inch, link = get_link(i + 1, in_channels, gr, grmul)
        links.append(link)
        layers.append(conv_layer_params(keys[i], inch, outch, kernel=3))
        if i % 2 == 0 or i == n_layers - 1:
            out_ch_total += outch
    return dict(links=links, layers=layers, out_channels=out_ch_total,
                keepBase=False)


def hard_block_forward(x, blk):
    layers_ = [x]
    for li, p in enumerate(blk["layers"]):
        link = blk["links"][li]
        tin = [layers_[i] for i in link]
        xin = jnp.concatenate(tin, axis=-1) if len(tin) > 1 else tin[0]
        layers_.append(conv_apply(xin, p))
    t = len(layers_)
    out_ = [layers_[i] for i in range(t)
            if (i == 0 and blk["keepBase"]) or i == t - 1 or i % 2 == 1]
    return jnp.concatenate(out_, axis=-1)


def build_hardnet85_params(key):
    first_ch = [48, 96]
    ch_list = [192, 256, 320, 480, 720, 1280]
    grmul = 1.7
    gr = [24, 24, 28, 36, 48, 256]
    n_layers = [8, 16, 16, 16, 16, 4]
    down_samp = [1, 0, 1, 0, 1, 0]
    blks = len(n_layers)

    keys = iter(jax.random.split(key, 64))

    base = []
    base.append(("conv", conv_layer_params(next(keys), 3, first_ch[0], 3,
                                           stride=2)))
    base.append(("conv", conv_layer_params(next(keys), first_ch[0],
                                           first_ch[1], 3)))
    base.append(("maxpool", dict(k=3, stride=2, pad=1)))

    ch = first_ch[1]
    for i in range(blks):
        blk = hard_block_params(next(keys), ch, gr[i], grmul, n_layers[i])
        ch = blk["out_channels"]
        base.append(("hardblock", blk))
        if i == blks - 1:  # arch == 85
            base.append(("dropout", None))
        base.append(("conv", conv_layer_params(next(keys), ch, ch_list[i], 1)))
        ch = ch_list[i]
        if down_samp[i] == 1:
            base.append(("maxpool", dict(k=2, stride=2, pad=0)))

    channels = [1280, 720, 480, 320, 256]
    decoder = dict(
        conv11=conv_layer_params(next(keys), 2 * channels[0], channels[1], 3,
                                 act="relu", with_bn=False),
        conv12=conv_layer_params(next(keys), 2 * channels[1], channels[2], 3,
                                 act="tanh", with_bn=True),
        conv21=conv_layer_params(next(keys), 2 * channels[2], channels[3], 3,
                                 act="relu", with_bn=False),
        conv22=conv_layer_params(next(keys), 2 * channels[3], channels[4], 3,
                                 act="tanh", with_bn=True),
    )
    return dict(base=base, decoder=decoder)


# ---------------------------------------------------------------------------
# Forward pass (mirrors HarDNet.forward / HarDNetDecoder.forward)
# ---------------------------------------------------------------------------
def decoder_forward(x, x1, x2, x3, x4, dp):
    x = jnp.concatenate([x, x4], axis=-1)
    x = conv_apply(x, dp["conv11"])                       # conv + relu
    x = bilinear_resize(x, out_h=2 * x.shape[1], out_w=2 * x.shape[2],
                        align_corners=True)               # up1
    x = jnp.concatenate([x, x3], axis=-1)
    x = conv_apply(x, dp["conv12"])                       # conv + bn + tanh
    x = jnp.concatenate([x, x2], axis=-1)
    x = conv_apply(x, dp["conv21"])                       # conv + relu
    x = bilinear_resize(x, out_h=2 * x.shape[1], out_w=2 * x.shape[2],
                        align_corners=True)               # up2
    x = jnp.concatenate([x, x1], axis=-1)
    x = conv_apply(x, dp["conv22"])                       # conv + bn + tanh
    return x


def hardnet_forward(x_nchw, params):
    hin = x_nchw.shape[2]
    x = jnp.transpose(x_nchw, (0, 2, 3, 1)).astype(jnp.bfloat16)  # NCHW->NHWC
    # The PyTorch forward hard-codes skip shapes (320x128x128, 480x64x64,
    # 720x64x64, 1280x32x32), i.e. the stride-8/16/32 maps of a 1024x1024
    # input.  The same layers are detected here relative to the input
    # resolution so the model also runs at small test sizes.
    s8, s16, s32 = hin // 8, hin // 16, hin // 32
    x1 = x2 = x3 = x4 = None
    for kind, p in params["base"]:
        if kind == "conv":
            x = conv_apply(x, p)
        elif kind == "maxpool":
            x = maxpool2d(x, k=p["k"], stride=p["stride"], pad=p["pad"])
        elif kind == "hardblock":
            x = hard_block_forward(x, p)
        elif kind == "dropout":
            pass  # TODO(synk): eval-mode identity; train dropout not reproduced.
        h, w, c = x.shape[1], x.shape[2], x.shape[3]
        if h == s32 and w == s32 and c == 1280:
            x4 = x
        elif h == s16 and w == s16 and c == 720:
            x3 = x
        elif h == s16 and w == s16 and c == 480:
            x2 = x
        elif h == s8 and w == s8 and c == 320:
            x1 = x
    x = decoder_forward(x, x1, x2, x3, x4, params["decoder"])
    x = bilinear_resize(x, out_h=64, out_w=64, align_corners=False)
    return jnp.transpose(x, (0, 3, 1, 2)).astype(jnp.float32)  # NHWC -> NCHW


# ---------------------------------------------------------------------------
# Main
# ---------------------------------------------------------------------------
if __name__ == "__main__":
    root = jax.random.PRNGKey(0)
    k_params, k_input = jax.random.split(root)

    params = build_hardnet85_params(k_params)

    # Small input (batch=1, 64x64).  The skip captures are resolution-relative
    # (see hardnet_forward); at 1024x1024 the behavior matches the PyTorch
    # module's hard-coded shape checks exactly.
    x = jax.random.normal(k_input, (1, 3, 64, 64), jnp.float32)

    out = hardnet_forward(x, params)
    out = jax.block_until_ready(out)

    assert out.shape == (1, 256, 64, 64), out.shape
    assert out.dtype == jnp.float32
    assert bool(jnp.all(jnp.isfinite(out)))
    print("KERNEL_OK")
</pallas_src>

<mosaic_0001>
module attributes {stable_mosaic.version = 11 : i64} {
  func.func @_matmul_kernel(%arg0: i32, %arg1: memref<1024x27xbf16, #tpu.memory_space<vmem>>, %arg2: memref<27x48xbf16, #tpu.memory_space<vmem>>, %arg3: memref<1x48xf32, #tpu.memory_space<vmem>>, %arg4: memref<1x48xf32, #tpu.memory_space<vmem>>, %arg5: memref<1024x48xbf16, #tpu.memory_space<vmem>>) attributes {dimension_semantics = [#tpu.dimension_semantics<parallel>], iteration_bounds = array<i64: 1>, scalar_prefetch = 0 : i64, scratch_operands = 0 : i64, tpu.core_type = #tpu.core_type<tc>, window_params = [{transform_indices = @transform_0, window_bounds = array<i64: 1024, 27>}, {pipeline_mode = #tpu.pipeline_mode<synchronous>, transform_indices = @transform_1, window_bounds = array<i64: 27, 48>}, {pipeline_mode = #tpu.pipeline_mode<synchronous>, transform_indices = @transform_2, window_bounds = array<i64: 1, 48>}, {pipeline_mode = #tpu.pipeline_mode<synchronous>, transform_indices = @transform_3, window_bounds = array<i64: 1, 48>}, {transform_indices = @transform_4, window_bounds = array<i64: 1024, 48>}]} {
    %c0 = arith.constant 0 : index
    %c0_0 = arith.constant 0 : index
    %0 = vector.load %arg1[%c0, %c0_0] : memref<1024x27xbf16, #tpu.memory_space<vmem>>, vector<1024x27xbf16>
    %c0_1 = arith.constant 0 : index
    %c0_2 = arith.constant 0 : index
    %1 = vector.load %arg2[%c0_1, %c0_2] : memref<27x48xbf16, #tpu.memory_space<vmem>>, vector<27x48xbf16>
    %cst = arith.constant dense<0.000000e+00> : vector<1024x48xf32>
    %2 = tpu.matmul %0, %1, %cst {dimension_numbers = #tpu.dot_dimension_numbers<[1], [0], [0], [1], [0, 0, 1, 1], [], []>} : vector<1024x27xbf16>, vector<27x48xbf16>, vector<1024x48xf32> -> vector<1024x48xf32>
    %c0_3 = arith.constant 0 : index
    %c0_4 = arith.constant 0 : index
    %3 = vector.load %arg3[%c0_3, %c0_4] : memref<1x48xf32, #tpu.memory_space<vmem>>, vector<1x48xf32>
    %4 = vector.broadcast %3 : vector<1x48xf32> to vector<1024x48xf32>
    %5 = arith.mulf %2, %4 : vector<1024x48xf32>
    %c0_5 = arith.constant 0 : index
    %c0_6 = arith.constant 0 : index
    %6 = vector.load %arg4[%c0_5, %c0_6] : memref<1x48xf32, #tpu.memory_space<vmem>>, vector<1x48xf32>
    %7 = vector.broadcast %6 : vector<1x48xf32> to vector<1024x48xf32>
    %8 = arith.addf %5, %7 : vector<1024x48xf32>
    %cst_7 = arith.constant 0.000000e+00 : f32
    %9 = vector.broadcast %cst_7 : f32 to vector<1024x48xf32>
    %10 = arith.maximumf %8, %9 : vector<1024x48xf32>
    %cst_8 = arith.constant 6.000000e+00 : f32
    %11 = vector.broadcast %cst_8 : f32 to vector<1024x48xf32>
    %12 = arith.minimumf %10, %11 : vector<1024x48xf32>
    %13 = arith.truncf %12 : vector<1024x48xf32> to vector<1024x48xbf16>
    %c0_9 = arith.constant 0 : index
    %c0_10 = arith.constant 0 : index
    %14 = vector.load %arg5[%c0_9, %c0_10] : memref<1024x48xbf16, #tpu.memory_space<vmem>>, vector<1024x48xbf16>
    tpu.vector_store %arg5[%c0_9, %c0_10], %13 {strides = array<i32>} : memref<1024x48xbf16, #tpu.memory_space<vmem>>, vector<1024x48xbf16>,
    return
  }
  func.func @transform_0(%arg0: i32) -> (i32, i32) {
    %c0_i32 = arith.constant 0 : i32
    %c0_i32_0 = arith.constant 0 : i32
    return %arg0, %c0_i32 : i32, i32
  }
  func.func @transform_1(%arg0: i32) -> (i32, i32) {
    %c0_i32 = arith.constant 0 : i32
    %c0_i32_0 = arith.constant 0 : i32
    %c0_i32_1 = arith.constant 0 : i32
    return %c0_i32, %c0_i32_0 : i32, i32
  }
  func.func @transform_2(%arg0: i32) -> (i32, i32) {
    %c0_i32 = arith.constant 0 : i32
    %c0_i32_0 = arith.constant 0 : i32
    %c0_i32_1 = arith.constant 0 : i32
    return %c0_i32, %c0_i32_0 : i32, i32
  }
  func.func @transform_3(%arg0: i32) -> (i32, i32) {
    %c0_i32 = arith.constant 0 : i32
    %c0_i32_0 = arith.constant 0 : i32
    %c0_i32_1 = arith.constant 0 : i32
    return %c0_i32, %c0_i32_0 : i32, i32
  }
  func.func @transform_4(%arg0: i32) -> (i32, i32) {
    %c0_i32 = arith.constant 0 : i32
    %c0_i32_0 = arith.constant 0 : i32
    return %arg0, %c0_i32 : i32, i32
  }
}

</mosaic_0001>

<bundles_post_ra>
// kernel: conv3x3_s2_bn_act.1
= control target key start
LH: loop header
LB: loop body
LE: loop exit
PB: predicated region body
PF: predicated region fallthrough
CT: control target
= control target key end

     0   :  { %vm675_vm0 = vcmask 1044480   ;;  %vm676_vm1 = vcmask 1045504   ;;  %v2240_v3 = vmov 65535   ;;  %s2941_s0 = inlined_call_operand.vmem [shape: bf16[1024,27], index: 0, kind: input, shape index: {}]   ;;  %s2942_s1 = inlined_call_operand.vmem [shape: bf16[27,48], index: 1, kind: input, shape index: {}]   ;;  %s2943_s2 = inlined_call_operand.vmem [shape: f32[1,48], index: 2, kind: input, shape index: {}]   ;;  %s2944_s3 = inlined_call_operand.vmem [shape: f32[1,48], index: 3, kind: input, shape index: {}]   ;;  %s2945_s4 = inlined_call_operand.hbm [shape: bf16[1024,48], index: 4, kind: output, shape index: {}]  }
   0x1   :  { %v2068_v0 = vld [vmem:[%s2942_s1 + $0x8] sm:$0xf]  ;;  %v2199_v1 = vld [vmem:[%s2942_s1 + $0x8] sm:$0x30]  ;;  %v677_v4 = vsel %vm675_vm0, 4294967295, %v2240_v3 }
   0x2   :  { %v2069_v2 = vor.u32 %v2199_v1, %v2068_v0  ;;  %v678_v5 = vsel %vm676_vm1, %v677_v4, 0 }
   0x4   :  { %v680_v6 = vand.u32 %v2069_v2, %v678_v5 }
   0x5   :  { %9 = vsyncpa [#allocation3], 0  ;;  %v2198_v7 = vld [vmem:[%s2942_s1] sm:$0xff]  ;;  %vm482_vm2 = vcmask 220160   ;;  %v2135_v12 = vld [vmem:[%s2941_s0 + $0x8] sm:$0xff]  ;;  %vm1659_vm3 = vcmask 388096  }
   0x6   :  { %688 = vmatpush.bf16.msra.mxu0 %v680_v6  ;;  %2200 = vmatpush.bf16.msra.mxu1 %v680_v6  ;;  %v2134_v8 = vld [vmem:[%s2941_s0] sm:$0xff]  ;;  %v2151_v13 = vld [vmem:[%s2941_s0 + $0x88] sm:$0xff]  ;;  %v2136_v16 = vld [vmem:[%s2941_s0 + $0x10] sm:$0xff]  ;;  %s1794_s23 = sshll.u32 %s2945_s4, 4  ;;  %s2242_s24 = smov 64   ;;  %s1795_s23 = int_to_ptr.hbm [resolvable:$true] %s1794_s23 }
   0x7   :  { %2201 = vmatpush.bf16.msra.mxu2 %v680_v6  ;;  %2202 = vmatpush.bf16.msra.mxu3 %v680_v6  ;;  %v2150_v9 = vld [vmem:[%s2941_s0 + $0x80] sm:$0xff]  ;;  %v2167_v14 = vld [vmem:[%s2941_s0 + $0x108] sm:$0xff]  ;;  %v2152_v17 = vld [vmem:[%s2941_s0 + $0x90] sm:$0xff]  ;;  %s2243_s25 = smov 4  }
   0x8   :  { %v2166_v10 = vld [vmem:[%s2941_s0 + $0x100] sm:$0xff]  ;;  %v2183_v15 = vld [vmem:[%s2941_s0 + $0x188] sm:$0xff]  ;;  %v2168_v18 = vld [vmem:[%s2941_s0 + $0x110] sm:$0xff] }
   0x9   :  { %v2182_v11 = vld [vmem:[%s2941_s0 + $0x180] sm:$0xff]  ;;  %v2184_v19 = vld [vmem:[%s2941_s0 + $0x190] sm:$0xff]  ;;  %v2137_v20 = vld [vmem:[%s2941_s0 + $0x18] sm:$0xff] }
   0xa   :  { %689 = vmatpush.bf16.msra.mxu0 %v2198_v7  ;;  %2203 = vmatpush.bf16.msra.mxu1 %v2198_v7  ;;  %v2153_v21 = vld [vmem:[%s2941_s0 + $0x98] sm:$0xff]  ;;  %v2138_v24 = vld [vmem:[%s2941_s0 + $0x20] sm:$0xff]  ;;  %v2139_v28 = vld [vmem:[%s2941_s0 + $0x28] sm:$0xff] }
   0xb   :  { %2204 = vmatpush.bf16.msra.mxu2 %v2198_v7  ;;  %2205 = vmatpush.bf16.msra.mxu3 %v2198_v7  ;;  %v2169_v22 = vld [vmem:[%s2941_s0 + $0x118] sm:$0xff]  ;;  %v2154_v25 = vld [vmem:[%s2941_s0 + $0xa0] sm:$0xff]  ;;  %v2155_v29 = vld [vmem:[%s2941_s0 + $0xa8] sm:$0xff] }
   0xc   :  { %v2185_v23 = vld [vmem:[%s2941_s0 + $0x198] sm:$0xff]  ;;  %v2170_v26 = vld [vmem:[%s2941_s0 + $0x120] sm:$0xff]  ;;  %v2171_v30 = vld [vmem:[%s2941_s0 + $0x128] sm:$0xff] }
   0xd   :  { %2070 = vmatmul.msk.bf16.vlgmr.msra.gmra.mxu0 %vm482_vm2, %v2134_v8  ;;  %2086 = vmatmul.msk.bf16.vlgmr.msra.gmra.mxu1 %vm482_vm2, %v2150_v9  ;;  %v2186_v27 = vld [vmem:[%s2941_s0 + $0x1a0] sm:$0xff]  ;;  %v2187_v31 = vld [vmem:[%s2941_s0 + $0x1a8] sm:$0xff]  ;;  %v2140_v32 = vld [vmem:[%s2941_s0 + $0x30] sm:$0xff] }
   0xe   :  { %2102 = vmatmul.msk.bf16.vlgmr.msra.gmra.mxu2 %vm482_vm2, %v2166_v10  ;;  %2118 = vmatmul.msk.bf16.vlgmr.msra.gmra.mxu3 %vm482_vm2, %v2182_v11  ;;  %v2156_v33 = vld [vmem:[%s2941_s0 + $0xb0] sm:$0xff]  ;;  %v2141_v36 = vld [vmem:[%s2941_s0 + $0x38] sm:$0xff]  ;;  %v2409_v40 = vld [vmem:[%s2943_s2] ss:$0 sm:$0xff] }
   0xf   :  { %v2172_v34 = vld [vmem:[%s2941_s0 + $0x130] sm:$0xff]  ;;  %v2157_v37 = vld [vmem:[%s2941_s0 + $0xb8] sm:$0xff]  ;;  %v2414_v41 = vld [vmem:[%s2944_s3] ss:$0 sm:$0xff] }
  0x10   :  { %v2188_v35 = vld [vmem:[%s2941_s0 + $0x1b0] sm:$0xff]  ;;  %v2173_v38 = vld [vmem:[%s2941_s0 + $0x138] sm:$0xff]  ;;  %v2142_v42 = vld [vmem:[%s2941_s0 + $0x40] sm:$0xff] }
  0x11   :  { %v2189_v39 = vld [vmem:[%s2941_s0 + $0x1b8] sm:$0xff]  ;;  %v2158_v43 = vld [vmem:[%s2941_s0 + $0xc0] sm:$0xff] }
  0x12   :  { %v2174_v46 = vld [vmem:[%s2941_s0 + $0x140] sm:$0xff] }
  0x13   :  { %v2190_v47 = vld [vmem:[%s2941_s0 + $0x1c0] sm:$0xff] }
  0x1d   :  { %2071 = vmatmul.msk.bf16.gmra.mxu0 %vm482_vm2, %v2135_v12  ;;  %2087 = vmatmul.msk.bf16.gmra.mxu1 %vm482_vm2, %v2151_v13 }
  0x1e   :  { %2103 = vmatmul.msk.bf16.gmra.mxu2 %vm482_vm2, %v2167_v14  ;;  %2119 = vmatmul.msk.bf16.gmra.mxu3 %vm482_vm2, %v2183_v15 }
  0x2d   :  { %2072 = vmatmul.msk.bf16.gmra.mxu0 %vm482_vm2, %v2136_v16  ;;  %2088 = vmatmul.msk.bf16.gmra.mxu1 %vm482_vm2, %v2152_v17  ;;  %v2143_v16 = vld [vmem:[%s2941_s0 + $0x48] sm:$0xff] }
  0x2e   :  { %2104 = vmatmul.msk.bf16.gmra.mxu2 %vm482_vm2, %v2168_v18  ;;  %2120 = vmatmul.msk.bf16.gmra.mxu3 %vm482_vm2, %v2184_v19  ;;  %v2159_v17 = vld [vmem:[%s2941_s0 + $0xc8] sm:$0xff] }
  0x3d   :  { %2073 = vmatmul.msk.bf16.gmra.mxu0 %vm482_vm2, %v2137_v20  ;;  %2089 = vmatmul.msk.bf16.gmra.mxu1 %vm482_vm2, %v2153_v21 }
  0x3e   :  { %2105 = vmatmul.msk.bf16.gmra.mxu2 %vm482_vm2, %v2169_v22  ;;  %2121 = vmatmul.msk.bf16.gmra.mxu3 %vm482_vm2, %v2185_v23 }
  0x4d   :  { %2074 = vmatmul.msk.bf16.gmra.mxu0 %vm482_vm2, %v2138_v24  ;;  %2090 = vmatmul.msk.bf16.gmra.mxu1 %vm482_vm2, %v2154_v25  ;;  %v2175_v24 = vld [vmem:[%s2941_s0 + $0x148] sm:$0xff] }
  0x4e   :  { %2106 = vmatmul.msk.bf16.gmra.mxu2 %vm482_vm2, %v2170_v26  ;;  %2122 = vmatmul.msk.bf16.gmra.mxu3 %vm482_vm2, %v2186_v27  ;;  %v2191_v25 = vld [vmem:[%s2941_s0 + $0x1c8] sm:$0xff] }
  0x5d   :  { %2075 = vmatmul.msk.bf16.gmra.mxu0 %vm482_vm2, %v2139_v28  ;;  %2091 = vmatmul.msk.bf16.gmra.mxu1 %vm482_vm2, %v2155_v29 }
  0x5e   :  { %2107 = vmatmul.msk.bf16.gmra.mxu2 %vm482_vm2, %v2171_v30  ;;  %2123 = vmatmul.msk.bf16.gmra.mxu3 %vm482_vm2, %v2187_v31 }
  0x6d   :  { %2076 = vmatmul.msk.bf16.gmra.mxu0 %vm482_vm2, %v2140_v32  ;;  %2092 = vmatmul.msk.bf16.gmra.mxu1 %vm482_vm2, %v2156_v33 }
  0x6e   :  { %2108 = vmatmul.msk.bf16.gmra.mxu2 %vm482_vm2, %v2172_v34  ;;  %2124 = vmatmul.msk.bf16.gmra.mxu3 %vm482_vm2, %v2188_v35 }
  0x7d   :  { %2077 = vmatmul.msk.bf16.gmra.mxu0 %vm482_vm2, %v2141_v36  ;;  %2093 = vmatmul.msk.bf16.gmra.mxu1 %vm482_vm2, %v2157_v37 }
  0x7e   :  { %2109 = vmatmul.msk.bf16.gmra.mxu2 %vm482_vm2, %v2173_v38  ;;  %2125 = vmatmul.msk.bf16.gmra.mxu3 %vm482_vm2, %v2189_v39 }
  0x8a   :  { %v691_v44 = vpop.f32.mrf.mxu0  ;;  %v771_v45 = vpop.f32.mrf.mxu1 }
  0x8b   :  { %v1015_v48 = vmul.f32 %v2409_v40, %v691_v44  ;;  %v1047_v49 = vmul.f32 %v2409_v40, %v771_v45 }
  0x8d   :  { %v1147_v50 = vadd.f32 %v2414_v41, %v1015_v48  ;;  %v1179_v51 = vadd.f32 %v2414_v41, %v1047_v49  ;;  %2078 = vmatmul.msk.bf16.gmra.mxu0 %vm482_vm2, %v2142_v42  ;;  %2094 = vmatmul.msk.bf16.gmra.mxu1 %vm482_vm2, %v2158_v43 }
  0x8e   :  { %2110 = vmatmul.msk.bf16.gmra.mxu2 %vm482_vm2, %v2174_v46  ;;  %2126 = vmatmul.msk.bf16.gmra.mxu3 %vm482_vm2, %v2190_v47 }
  0x8f   :  { %v1275_v52 = vmax.f32 %v1147_v50, 0.0  ;;  %v1307_v53 = vmax.f32 %v1179_v51, 0.0 }
  0x91   :  { %v1403_v54 = vmin.f32 %v1275_v52, 6.0  ;;  %v1435_v55 = vmin.f32 %v1307_v53, 6.0  ;;  %v851_v56 = vpop.f32.mrf.mxu2  ;;  %v931_v57 = vpop.f32.mrf.mxu3 }
  0x92   :  { %v1079_v58 = vmul.f32 %v2409_v40, %v851_v56  ;;  %v1111_v59 = vmul.f32 %v2409_v40, %v931_v57  ;;  %v693_v60 = vpop.f32.mrf.mxu0  ;;  %v773_v61 = vpop.f32.mrf.mxu1 }
  0x93   :  { %v1531_v62 = vpack.c.bf16 %v1403_v54, %v1403_v54  ;;  %v1563_v63 = vpack.c.bf16 %v1435_v55, %v1435_v55  ;;  %v1016_v0 = vmul.f32 %v2409_v40, %v693_v60  ;;  %v1048_v1 = vmul.f32 %v2409_v40, %v773_v61 }
  0x94   :  { %v1211_v2 = vadd.f32 %v2414_v41, %v1079_v58  ;;  %v1243_v3 = vadd.f32 %v2414_v41, %v1111_v59 }
  0x95   :  { %1660 = vst.msk [vmem:[#allocation2] sm:$0xf] %vm1659_vm3, %v1531_v62  ;;  %v1148_v4 = vadd.f32 %v2414_v41, %v1016_v0  ;;  %v1180_v5 = vadd.f32 %v2414_v41, %v1048_v1 }
  0x96   :  { %1692 = vst.msk [vmem:[#allocation2 + $0x80] sm:$0xf] %vm1659_vm3, %v1563_v63  ;;  %v1339_v6 = vmax.f32 %v1211_v2, 0.0  ;;  %v1371_v7 = vmax.f32 %v1243_v3, 0.0 }
  0x97   :  { %v1276_v8 = vmax.f32 %v1148_v4, 0.0  ;;  %v1308_v9 = vmax.f32 %v1180_v5, 0.0 }
  0x98   :  { %v1467_v10 = vmin.f32 %v1339_v6, 6.0  ;;  %v1499_v11 = vmin.f32 %v1371_v7, 6.0  ;;  %v2144_v6 = vld [vmem:[%s2941_s0 + $0x50] sm:$0xff] }
  0x99   :  { %v1404_v12 = vmin.f32 %v1276_v8, 6.0  ;;  %v1436_v13 = vmin.f32 %v1308_v9, 6.0  ;;  %v853_v14 = vpop.f32.mrf.mxu2  ;;  %v933_v15 = vpop.f32.mrf.mxu3  ;;  %v2160_v7 = vld [vmem:[%s2941_s0 + $0xd0] sm:$0xff] }
  0x9a   :  { %v1595_v18 = vpack.c.bf16 %v1467_v10, %v1467_v10  ;;  %v1627_v19 = vpack.c.bf16 %v1499_v11, %v1499_v11  ;;  %v1080_v20 = vmul.f32 %v2409_v40, %v853_v14  ;;  %v1112_v21 = vmul.f32 %v2409_v40, %v933_v15  ;;  %v696_v22 = vpop.f32.mrf.mxu0  ;;  %v776_v23 = vpop.f32.mrf.mxu1  ;;  %v2176_v14 = vld [vmem:[%s2941_s0 + $0x150] sm:$0xff] }
  0x9b   :  { %v1532_v26 = vpack.c.bf16 %v1404_v12, %v1404_v12  ;;  %v1564_v27 = vpack.c.bf16 %v1436_v13, %v1436_v13  ;;  %v1017_v28 = vmul.f32 %v2409_v40, %v696_v22  ;;  %v1049_v29 = vmul.f32 %v2409_v40, %v776_v23  ;;  %v2192_v15 = vld [vmem:[%s2941_s0 + $0x1d0] sm:$0xff] }
  0x9c   :  { %1724 = vst.msk [vmem:[#allocation2 + $0x100] sm:$0xf] %vm1659_vm3, %v1595_v18  ;;  %v1212_v30 = vadd.f32 %v2414_v41, %v1080_v20  ;;  %v1244_v31 = vadd.f32 %v2414_v41, %v1112_v21 }
  0x9d   :  { %1756 = vst.msk [vmem:[#allocation2 + $0x180] sm:$0xf] %vm1659_vm3, %v1627_v19  ;;  %v1149_v32 = vadd.f32 %v2414_v41, %v1017_v28  ;;  %v1181_v33 = vadd.f32 %v2414_v41, %v1049_v29  ;;  %2079 = vmatmul.msk.bf16.gmra.mxu0 %vm482_vm2, %v2143_v16  ;;  %2095 = vmatmul.msk.bf16.gmra.mxu1 %vm482_vm2, %v2159_v17 }
  0x9e   :  { %1661 = vst.msk [vmem:[#allocation2 + $0x4] sm:$0xf] %vm1659_vm3, %v1532_v26  ;;  %v1340_v34 = vmax.f32 %v1212_v30, 0.0  ;;  %v1372_v35 = vmax.f32 %v1244_v31, 0.0  ;;  %2111 = vmatmul.msk.bf16.gmra.mxu2 %vm482_vm2, %v2175_v24  ;;  %2127 = vmatmul.msk.bf16.gmra.mxu3 %vm482_vm2, %v2191_v25 }
  0x9f   :  { %1693 = vst.msk [vmem:[#allocation2 + $0x84] sm:$0xf] %vm1659_vm3, %v1564_v27  ;;  %v1277_v36 = vmax.f32 %v1149_v32, 0.0  ;;  %v1309_v37 = vmax.f32 %v1181_v33, 0.0 }
  0xa0   :  { %v1468_v38 = vmin.f32 %v1340_v34, 6.0  ;;  %v1500_v39 = vmin.f32 %v1372_v35, 6.0 }
  0xa1   :  { %v1405_v42 = vmin.f32 %v1277_v36, 6.0  ;;  %v1437_v43 = vmin.f32 %v1309_v37, 6.0  ;;  %v856_v44 = vpop.f32.mrf.mxu2  ;;  %v936_v45 = vpop.f32.mrf.mxu3 }
  0xa2   :  { %v1596_v46 = vpack.c.bf16 %v1468_v38, %v1468_v38  ;;  %v1628_v47 = vpack.c.bf16 %v1500_v39, %v1500_v39  ;;  %v1081_v48 = vmul.f32 %v2409_v40, %v856_v44  ;;  %v1113_v49 = vmul.f32 %v2409_v40, %v936_v45  ;;  %v698_v50 = vpop.f32.mrf.mxu0  ;;  %v778_v51 = vpop.f32.mrf.mxu1 }
  0xa3   :  { %v1533_v52 = vpack.c.bf16 %v1405_v42, %v1405_v42  ;;  %v1565_v53 = vpack.c.bf16 %v1437_v43, %v1437_v43  ;;  %v1018_v54 = vmul.f32 %v2409_v40, %v698_v50  ;;  %v1050_v55 = vmul.f32 %v2409_v40, %v778_v51 }
  0xa4   :  { %1725 = vst.msk [vmem:[#allocation2 + $0x104] sm:$0xf] %vm1659_vm3, %v1596_v46  ;;  %v1213_v56 = vadd.f32 %v2414_v41, %v1081_v48  ;;  %v1245_v57 = vadd.f32 %v2414_v41, %v1113_v49 }
  0xa5   :  { %1757 = vst.msk [vmem:[#allocation2 + $0x184] sm:$0xf] %vm1659_vm3, %v1628_v47  ;;  %v1150_v58 = vadd.f32 %v2414_v41, %v1018_v54  ;;  %v1182_v59 = vadd.f32 %v2414_v41, %v1050_v55 }
  0xa6   :  { %1662 = vst.msk [vmem:[#allocation2 + $0x8] sm:$0xf] %vm1659_vm3, %v1533_v52  ;;  %v1341_v60 = vmax.f32 %v1213_v56, 0.0  ;;  %v1373_v61 = vmax.f32 %v1245_v57, 0.0 }
  0xa7   :  { %1694 = vst.msk [vmem:[#allocation2 + $0x88] sm:$0xf] %vm1659_vm3, %v1565_v53  ;;  %v1278_v62 = vmax.f32 %v1150_v58, 0.0  ;;  %v1310_v63 = vmax.f32 %v1182_v59, 0.0 }
  0xa8   :  { %v1469_v0 = vmin.f32 %v1341_v60, 6.0  ;;  %v1501_v1 = vmin.f32 %v1373_v61, 6.0  ;;  %v2145_v60 = vld [vmem:[%s2941_s0 + $0x58] sm:$0xff] }
  0xa9   :  { %v1406_v2 = vmin.f32 %v1278_v62, 6.0  ;;  %v1438_v3 = vmin.f32 %v1310_v63, 6.0  ;;  %v858_v4 = vpop.f32.mrf.mxu2  ;;  %v938_v5 = vpop.f32.mrf.mxu3  ;;  %v2161_v61 = vld [vmem:[%s2941_s0 + $0xd8] sm:$0xff] }
  0xaa   :  { %v1597_v8 = vpack.c.bf16 %v1469_v0, %v1469_v0  ;;  %v1629_v9 = vpack.c.bf16 %v1501_v1, %v1501_v1  ;;  %v1082_v10 = vmul.f32 %v2409_v40, %v858_v4  ;;  %v1114_v11 = vmul.f32 %v2409_v40, %v938_v5  ;;  %v701_v12 = vpop.f32.mrf.mxu0  ;;  %v781_v13 = vpop.f32.mrf.mxu1  ;;  %v2177_v4 = vld [vmem:[%s2941_s0 + $0x158] sm:$0xff] }
  0xab   :  { %v1534_v16 = vpack.c.bf16 %v1406_v2, %v1406_v2  ;;  %v1566_v17 = vpack.c.bf16 %v1438_v3, %v1438_v3  ;;  %v1019_v18 = vmul.f32 %v2409_v40, %v701_v12  ;;  %v1051_v19 = vmul.f32 %v2409_v40, %v781_v13  ;;  %v2193_v5 = vld [vmem:[%s2941_s0 + $0x1d8] sm:$0xff] }
  0xac   :  { %1726 = vst.msk [vmem:[#allocation2 + $0x108] sm:$0xf] %vm1659_vm3, %v1597_v8  ;;  %v1214_v20 = vadd.f32 %v2414_v41, %v1082_v10  ;;  %v1246_v21 = vadd.f32 %v2414_v41, %v1114_v11 }
  0xad   :  { %1758 = vst.msk [vmem:[#allocation2 + $0x188] sm:$0xf] %vm1659_vm3, %v1629_v9  ;;  %v1151_v22 = vadd.f32 %v2414_v41, %v1019_v18  ;;  %v1183_v23 = vadd.f32 %v2414_v41, %v1051_v19  ;;  %2080 = vmatmul.msk.bf16.gmra.mxu0 %vm482_vm2, %v2144_v6  ;;  %2096 = vmatmul.msk.bf16.gmra.mxu1 %vm482_vm2, %v2160_v7 }
  0xae   :  { %1663 = vst.msk [vmem:[#allocation2 + $0xc] sm:$0xf] %vm1659_vm3, %v1534_v16  ;;  %v1342_v24 = vmax.f32 %v1214_v20, 0.0  ;;  %v1374_v25 = vmax.f32 %v1246_v21, 0.0  ;;  %2112 = vmatmul.msk.bf16.gmra.mxu2 %vm482_vm2, %v2176_v14  ;;  %2128 = vmatmul.msk.bf16.gmra.mxu3 %vm482_vm2, %v2192_v15 }
  0xaf   :  { %1695 = vst.msk [vmem:[#allocation2 + $0x8c] sm:$0xf] %vm1659_vm3, %v1566_v17  ;;  %v1279_v26 = vmax.f32 %v1151_v22, 0.0  ;;  %v1311_v27 = vmax.f32 %v1183_v23, 0.0 }
  0xb0   :  { %v1470_v28 = vmin.f32 %v1342_v24, 6.0  ;;  %v1502_v29 = vmin.f32 %v1374_v25, 6.0 }
  0xb1   :  { %v1407_v30 = vmin.f32 %v1279_v26, 6.0  ;;  %v1439_v31 = vmin.f32 %v1311_v27, 6.0  ;;  %v861_v32 = vpop.f32.mrf.mxu2  ;;  %v941_v33 = vpop.f32.mrf.mxu3 }
  0xb2   :  { %v1598_v34 = vpack.c.bf16 %v1470_v28, %v1470_v28  ;;  %v1630_v35 = vpack.c.bf16 %v1502_v29, %v1502_v29  ;;  %v1083_v36 = vmul.f32 %v2409_v40, %v861_v32  ;;  %v1115_v37 = vmul.f32 %v2409_v40, %v941_v33  ;;  %v703_v38 = vpop.f32.mrf.mxu0  ;;  %v783_v39 = vpop.f32.mrf.mxu1 }
  0xb3   :  { %v1535_v42 = vpack.c.bf16 %v1407_v30, %v1407_v30  ;;  %v1567_v43 = vpack.c.bf16 %v1439_v31, %v1439_v31  ;;  %v1020_v44 = vmul.f32 %v2409_v40, %v703_v38  ;;  %v1052_v45 = vmul.f32 %v2409_v40, %v783_v39 }
  0xb4   :  { %1727 = vst.msk [vmem:[#allocation2 + $0x10c] sm:$0xf] %vm1659_vm3, %v1598_v34  ;;  %v1215_v46 = vadd.f32 %v2414_v41, %v1083_v36  ;;  %v1247_v47 = vadd.f32 %v2414_v41, %v1115_v37 }
  0xb5   :  { %1759 = vst.msk [vmem:[#allocation2 + $0x18c] sm:$0xf] %vm1659_vm3, %v1630_v35  ;;  %v1152_v48 = vadd.f32 %v2414_v41, %v1020_v44  ;;  %v1184_v49 = vadd.f32 %v2414_v41, %v1052_v45 }
  0xb6   :  { %1664 = vst.msk [vmem:[#allocation2 + $0x10] sm:$0xf] %vm1659_vm3, %v1535_v42  ;;  %v1343_v50 = vmax.f32 %v1215_v46, 0.0  ;;  %v1375_v51 = vmax.f32 %v1247_v47, 0.0 }
  0xb7   :  { %1696 = vst.msk [vmem:[#allocation2 + $0x90] sm:$0xf] %vm1659_vm3, %v1567_v43  ;;  %v1280_v52 = vmax.f32 %v1152_v48, 0.0  ;;  %v1312_v53 = vmax.f32 %v1184_v49, 0.0 }
  0xb8   :  { %v1471_v54 = vmin.f32 %v1343_v50, 6.0  ;;  %v1503_v55 = vmin.f32 %v1375_v51, 6.0  ;;  %v2146_v50 = vld [vmem:[%s2941_s0 + $0x60] sm:$0xff] }
  0xb9   :  { %v1408_v56 = vmin.f32 %v1280_v52, 6.0  ;;  %v1440_v57 = vmin.f32 %v1312_v53, 6.0  ;;  %v863_v58 = vpop.f32.mrf.mxu2  ;;  %v943_v59 = vpop.f32.mrf.mxu3  ;;  %v2162_v51 = vld [vmem:[%s2941_s0 + $0xe0] sm:$0xff] }
  0xba   :  { %v1599_v62 = vpack.c.bf16 %v1471_v54, %v1471_v54  ;;  %v1631_v63 = vpack.c.bf16 %v1503_v55, %v1503_v55  ;;  %v1084_v0 = vmul.f32 %v2409_v40, %v863_v58  ;;  %v1116_v1 = vmul.f32 %v2409_v40, %v943_v59  ;;  %v706_v2 = vpop.f32.mrf.mxu0  ;;  %v786_v3 = vpop.f32.mrf.mxu1  ;;  %v2178_v58 = vld [vmem:[%s2941_s0 + $0x160] sm:$0xff] }
  0xbb   :  { %v1536_v6 = vpack.c.bf16 %v1408_v56, %v1408_v56  ;;  %v1568_v7 = vpack.c.bf16 %v1440_v57, %v1440_v57  ;;  %v1021_v8 = vmul.f32 %v2409_v40, %v706_v2  ;;  %v1053_v9 = vmul.f32 %v2409_v40, %v786_v3  ;;  %v2194_v59 = vld [vmem:[%s2941_s0 + $0x1e0] sm:$0xff] }
  0xbc   :  { %1728 = vst.msk [vmem:[#allocation2 + $0x110] sm:$0xf] %vm1659_vm3, %v1599_v62  ;;  %v1216_v10 = vadd.f32 %v2414_v41, %v1084_v0  ;;  %v1248_v11 = vadd.f32 %v2414_v41, %v1116_v1 }
  0xbd   :  { %1760 = vst.msk [vmem:[#allocation2 + $0x190] sm:$0xf] %vm1659_vm3, %v1631_v63  ;;  %v1153_v12 = vadd.f32 %v2414_v41, %v1021_v8  ;;  %v1185_v13 = vadd.f32 %v2414_v41, %v1053_v9  ;;  %2081 = vmatmul.msk.bf16.gmra.mxu0 %vm482_vm2, %v2145_v60  ;;  %2097 = vmatmul.msk.bf16.gmra.mxu1 %vm482_vm2, %v2161_v61 }
  0xbe   :  { %1665 = vst.msk [vmem:[#allocation2 + $0x14] sm:$0xf] %vm1659_vm3, %v1536_v6  ;;  %v1344_v14 = vmax.f32 %v1216_v10, 0.0  ;;  %v1376_v15 = vmax.f32 %v1248_v11, 0.0  ;;  %2113 = vmatmul.msk.bf16.gmra.mxu2 %vm482_vm2, %v2177_v4  ;;  %2129 = vmatmul.msk.bf16.gmra.mxu3 %vm482_vm2, %v2193_v5 }
  0xbf   :  { %1697 = vst.msk [vmem:[#allocation2 + $0x94] sm:$0xf] %vm1659_vm3, %v1568_v7  ;;  %v1281_v16 = vmax.f32 %v1153_v12, 0.0  ;;  %v1313_v17 = vmax.f32 %v1185_v13, 0.0 }
  0xc0   :  { %v1472_v18 = vmin.f32 %v1344_v14, 6.0  ;;  %v1504_v19 = vmin.f32 %v1376_v15, 6.0 }
  0xc1   :  { %v1409_v20 = vmin.f32 %v1281_v16, 6.0  ;;  %v1441_v21 = vmin.f32 %v1313_v17, 6.0  ;;  %v866_v22 = vpop.f32.mrf.mxu2  ;;  %v946_v23 = vpop.f32.mrf.mxu3 }
  0xc2   :  { %v1600_v24 = vpack.c.bf16 %v1472_v18, %v1472_v18  ;;  %v1632_v25 = vpack.c.bf16 %v1504_v19, %v1504_v19  ;;  %v1085_v26 = vmul.f32 %v2409_v40, %v866_v22  ;;  %v1117_v27 = vmul.f32 %v2409_v40, %v946_v23  ;;  %v708_v28 = vpop.f32.mrf.mxu0  ;;  %v788_v29 = vpop.f32.mrf.mxu1 }
  0xc3   :  { %v1537_v30 = vpack.c.bf16 %v1409_v20, %v1409_v20  ;;  %v1569_v31 = vpack.c.bf16 %v1441_v21, %v1441_v21  ;;  %v1022_v32 = vmul.f32 %v2409_v40, %v708_v28  ;;  %v1054_v33 = vmul.f32 %v2409_v40, %v788_v29 }
  0xc4   :  { %1729 = vst.msk [vmem:[#allocation2 + $0x114] sm:$0xf] %vm1659_vm3, %v1600_v24  ;;  %v1217_v34 = vadd.f32 %v2414_v41, %v1085_v26  ;;  %v1249_v35 = vadd.f32 %v2414_v41, %v1117_v27 }
  0xc5   :  { %1761 = vst.msk [vmem:[#allocation2 + $0x194] sm:$0xf] %vm1659_vm3, %v1632_v25  ;;  %v1154_v36 = vadd.f32 %v2414_v41, %v1022_v32  ;;  %v1186_v37 = vadd.f32 %v2414_v41, %v1054_v33 }
  0xc6   :  { %1666 = vst.msk [vmem:[#allocation2 + $0x18] sm:$0xf] %vm1659_vm3, %v1537_v30  ;;  %v1345_v38 = vmax.f32 %v1217_v34, 0.0  ;;  %v1377_v39 = vmax.f32 %v1249_v35, 0.0 }
  0xc7   :  { %1698 = vst.msk [vmem:[#allocation2 + $0x98] sm:$0xf] %vm1659_vm3, %v1569_v31  ;;  %v1282_v42 = vmax.f32 %v1154_v36, 0.0  ;;  %v1314_v43 = vmax.f32 %v1186_v37, 0.0 }
  0xc8   :  { %v1473_v44 = vmin.f32 %v1345_v38, 6.0  ;;  %v1505_v45 = vmin.f32 %v1377_v39, 6.0  ;;  %v2147_v38 = vld [vmem:[%s2941_s0 + $0x68] sm:$0xff] }
  0xc9   :  { %v1410_v46 = vmin.f32 %v1282_v42, 6.0  ;;  %v1442_v47 = vmin.f32 %v1314_v43, 6.0  ;;  %v868_v48 = vpop.f32.mrf.mxu2  ;;  %v948_v49 = vpop.f32.mrf.mxu3  ;;  %v2163_v39 = vld [vmem:[%s2941_s0 + $0xe8] sm:$0xff] }
  0xca   :  { %v1601_v52 = vpack.c.bf16 %v1473_v44, %v1473_v44  ;;  %v1633_v53 = vpack.c.bf16 %v1505_v45, %v1505_v45  ;;  %v1086_v54 = vmul.f32 %v2409_v40, %v868_v48  ;;  %v1118_v55 = vmul.f32 %v2409_v40, %v948_v49  ;;  %v711_v56 = vpop.f32.mrf.mxu0  ;;  %v791_v57 = vpop.f32.mrf.mxu1  ;;  %v2179_v48 = vld [vmem:[%s2941_s0 + $0x168] sm:$0xff] }
  0xcb   :  { %v1538_v60 = vpack.c.bf16 %v1410_v46, %v1410_v46  ;;  %v1570_v61 = vpack.c.bf16 %v1442_v47, %v1442_v47  ;;  %v1023_v62 = vmul.f32 %v2409_v40, %v711_v56  ;;  %v1055_v63 = vmul.f32 %v2409_v40, %v791_v57  ;;  %v2195_v49 = vld [vmem:[%s2941_s0 + $0x1e8] sm:$0xff] }
  0xcc   :  { %1730 = vst.msk [vmem:[#allocation2 + $0x118] sm:$0xf] %vm1659_vm3, %v1601_v52  ;;  %v1218_v0 = vadd.f32 %v2414_v41, %v1086_v54  ;;  %v1250_v1 = vadd.f32 %v2414_v41, %v1118_v55 }
  0xcd   :  { %1762 = vst.msk [vmem:[#allocation2 + $0x198] sm:$0xf] %vm1659_vm3, %v1633_v53  ;;  %v1155_v2 = vadd.f32 %v2414_v41, %v1023_v62  ;;  %v1187_v3 = vadd.f32 %v2414_v41, %v1055_v63  ;;  %2082 = vmatmul.msk.bf16.gmra.mxu0 %vm482_vm2, %v2146_v50  ;;  %2098 = vmatmul.msk.bf16.gmra.mxu1 %vm482_vm2, %v2162_v51 }
  0xce   :  { %1667 = vst.msk [vmem:[#allocation2 + $0x1c] sm:$0xf] %vm1659_vm3, %v1538_v60  ;;  %v1346_v4 = vmax.f32 %v1218_v0, 0.0  ;;  %v1378_v5 = vmax.f32 %v1250_v1, 0.0  ;;  %2114 = vmatmul.msk.bf16.gmra.mxu2 %vm482_vm2, %v2178_v58  ;;  %2130 = vmatmul.msk.bf16.gmra.mxu3 %vm482_vm2, %v2194_v59 }
  0xcf   :  { %1699 = vst.msk [vmem:[#allocation2 + $0x9c] sm:$0xf] %vm1659_vm3, %v1570_v61  ;;  %v1283_v6 = vmax.f32 %v1155_v2, 0.0  ;;  %v1315_v7 = vmax.f32 %v1187_v3, 0.0 }
  0xd0   :  { %v1474_v8 = vmin.f32 %v1346_v4, 6.0  ;;  %v1506_v9 = vmin.f32 %v1378_v5, 6.0 }
  0xd1   :  { %v1411_v10 = vmin.f32 %v1283_v6, 6.0  ;;  %v1443_v11 = vmin.f32 %v1315_v7, 6.0  ;;  %v871_v12 = vpop.f32.mrf.mxu2  ;;  %v951_v13 = vpop.f32.mrf.mxu3 }
  0xd2   :  { %v1602_v14 = vpack.c.bf16 %v1474_v8, %v1474_v8  ;;  %v1634_v15 = vpack.c.bf16 %v1506_v9, %v1506_v9  ;;  %v1087_v16 = vmul.f32 %v2409_v40, %v871_v12  ;;  %v1119_v17 = vmul.f32 %v2409_v40, %v951_v13  ;;  %v713_v18 = vpop.f32.mrf.mxu0  ;;  %v793_v19 = vpop.f32.mrf.mxu1 }
  0xd3   :  { %v1539_v20 = vpack.c.bf16 %v1411_v10, %v1411_v10  ;;  %v1571_v21 = vpack.c.bf16 %v1443_v11, %v1443_v11  ;;  %v1024_v22 = vmul.f32 %v2409_v40, %v713_v18  ;;  %v1056_v23 = vmul.f32 %v2409_v40, %v793_v19 }
  0xd4   :  { %1731 = vst.msk [vmem:[#allocation2 + $0x11c] sm:$0xf] %vm1659_vm3, %v1602_v14  ;;  %v1219_v24 = vadd.f32 %v2414_v41, %v1087_v16  ;;  %v1251_v25 = vadd.f32 %v2414_v41, %v1119_v17 }
  0xd5   :  { %1763 = vst.msk [vmem:[#allocation2 + $0x19c] sm:$0xf] %vm1659_vm3, %v1634_v15  ;;  %v1156_v26 = vadd.f32 %v2414_v41, %v1024_v22  ;;  %v1188_v27 = vadd.f32 %v2414_v41, %v1056_v23 }
  0xd6   :  { %1668 = vst.msk [vmem:[#allocation2 + $0x20] sm:$0xf] %vm1659_vm3, %v1539_v20  ;;  %v1347_v28 = vmax.f32 %v1219_v24, 0.0  ;;  %v1379_v29 = vmax.f32 %v1251_v25, 0.0 }
  0xd7   :  { %1700 = vst.msk [vmem:[#allocation2 + $0xa0] sm:$0xf] %vm1659_vm3, %v1571_v21  ;;  %v1284_v30 = vmax.f32 %v1156_v26, 0.0  ;;  %v1316_v31 = vmax.f32 %v1188_v27, 0.0 }
  0xd8   :  { %v1475_v32 = vmin.f32 %v1347_v28, 6.0  ;;  %v1507_v33 = vmin.f32 %v1379_v29, 6.0  ;;  %v2148_v28 = vld [vmem:[%s2941_s0 + $0x70] sm:$0xff] }
  0xd9   :  { %v1412_v34 = vmin.f32 %v1284_v30, 6.0  ;;  %v1444_v35 = vmin.f32 %v1316_v31, 6.0  ;;  %v873_v36 = vpop.f32.mrf.mxu2  ;;  %v953_v37 = vpop.f32.mrf.mxu3  ;;  %v2164_v29 = vld [vmem:[%s2941_s0 + $0xf0] sm:$0xff] }
  0xda   :  { %v1603_v42 = vpack.c.bf16 %v1475_v32, %v1475_v32  ;;  %v1635_v43 = vpack.c.bf16 %v1507_v33, %v1507_v33  ;;  %v1088_v44 = vmul.f32 %v2409_v40, %v873_v36  ;;  %v1120_v45 = vmul.f32 %v2409_v40, %v953_v37  ;;  %v716_v46 = vpop.f32.mrf.mxu0  ;;  %v796_v47 = vpop.f32.mrf.mxu1  ;;  %v2180_v36 = vld [vmem:[%s2941_s0 + $0x170] sm:$0xff] }
  0xdb   :  { %v1540_v50 = vpack.c.bf16 %v1412_v34, %v1412_v34  ;;  %v1572_v51 = vpack.c.bf16 %v1444_v35, %v1444_v35  ;;  %v1025_v52 = vmul.f32 %v2409_v40, %v716_v46  ;;  %v1057_v53 = vmul.f32 %v2409_v40, %v796_v47  ;;  %v2196_v37 = vld [vmem:[%s2941_s0 + $0x1f0] sm:$0xff] }
  0xdc   :  { %1732 = vst.msk [vmem:[#allocation2 + $0x120] sm:$0xf] %vm1659_vm3, %v1603_v42  ;;  %v1220_v54 = vadd.f32 %v2414_v41, %v1088_v44  ;;  %v1252_v55 = vadd.f32 %v2414_v41, %v1120_v45 }
  0xdd   :  { %1764 = vst.msk [vmem:[#allocation2 + $0x1a0] sm:$0xf] %vm1659_vm3, %v1635_v43  ;;  %v1157_v56 = vadd.f32 %v2414_v41, %v1025_v52  ;;  %v1189_v57 = vadd.f32 %v2414_v41, %v1057_v53  ;;  %2083 = vmatmul.msk.bf16.gmra.mxu0 %vm482_vm2, %v2147_v38  ;;  %2099 = vmatmul.msk.bf16.gmra.mxu1 %vm482_vm2, %v2163_v39 }
  0xde   :  { %1669 = vst.msk [vmem:[#allocation2 + $0x24] sm:$0xf] %vm1659_vm3, %v1540_v50  ;;  %v1348_v58 = vmax.f32 %v1220_v54, 0.0  ;;  %v1380_v59 = vmax.f32 %v1252_v55, 0.0  ;;  %2115 = vmatmul.msk.bf16.gmra.mxu2 %vm482_vm2, %v2179_v48  ;;  %2131 = vmatmul.msk.bf16.gmra.mxu3 %vm482_vm2, %v2195_v49 }
  0xdf   :  { %1701 = vst.msk [vmem:[#allocation2 + $0xa4] sm:$0xf] %vm1659_vm3, %v1572_v51  ;;  %v1285_v60 = vmax.f32 %v1157_v56, 0.0  ;;  %v1317_v61 = vmax.f32 %v1189_v57, 0.0 }
  0xe0   :  { %v1476_v62 = vmin.f32 %v1348_v58, 6.0  ;;  %v1508_v63 = vmin.f32 %v1380_v59, 6.0 }
  0xe1   :  { %v1413_v0 = vmin.f32 %v1285_v60, 6.0  ;;  %v1445_v1 = vmin.f32 %v1317_v61, 6.0  ;;  %v876_v2 = vpop.f32.mrf.mxu2  ;;  %v956_v3 = vpop.f32.mrf.mxu3 }
  0xe2   :  { %v1604_v4 = vpack.c.bf16 %v1476_v62, %v1476_v62  ;;  %v1636_v5 = vpack.c.bf16 %v1508_v63, %v1508_v63  ;;  %v1089_v6 = vmul.f32 %v2409_v40, %v876_v2  ;;  %v1121_v7 = vmul.f32 %v2409_v40, %v956_v3  ;;  %v718_v8 = vpop.f32.mrf.mxu0  ;;  %v798_v9 = vpop.f32.mrf.mxu1 }
  0xe3   :  { %v1541_v10 = vpack.c.bf16 %v1413_v0, %v1413_v0  ;;  %v1573_v11 = vpack.c.bf16 %v1445_v1, %v1445_v1  ;;  %v1026_v12 = vmul.f32 %v2409_v40, %v718_v8  ;;  %v1058_v13 = vmul.f32 %v2409_v40, %v798_v9 }
  0xe4   :  { %1733 = vst.msk [vmem:[#allocation2 + $0x124] sm:$0xf] %vm1659_vm3, %v1604_v4  ;;  %v1221_v14 = vadd.f32 %v2414_v41, %v1089_v6  ;;  %v1253_v15 = vadd.f32 %v2414_v41, %v1121_v7 }
  0xe5   :  { %1765 = vst.msk [vmem:[#allocation2 + $0x1a4] sm:$0xf] %vm1659_vm3, %v1636_v5  ;;  %v1158_v16 = vadd.f32 %v2414_v41, %v1026_v12  ;;  %v1190_v17 = vadd.f32 %v2414_v41, %v1058_v13 }
  0xe6   :  { %1670 = vst.msk [vmem:[#allocation2 + $0x28] sm:$0xf] %vm1659_vm3, %v1541_v10  ;;  %v1349_v18 = vmax.f32 %v1221_v14, 0.0  ;;  %v1381_v19 = vmax.f32 %v1253_v15, 0.0 }
  0xe7   :  { %1702 = vst.msk [vmem:[#allocation2 + $0xa8] sm:$0xf] %vm1659_vm3, %v1573_v11  ;;  %v1286_v20 = vmax.f32 %v1158_v16, 0.0  ;;  %v1318_v21 = vmax.f32 %v1190_v17, 0.0 }
  0xe8   :  { %v1477_v22 = vmin.f32 %v1349_v18, 6.0  ;;  %v1509_v23 = vmin.f32 %v1381_v19, 6.0  ;;  %v2149_v18 = vld [vmem:[%s2941_s0 + $0x78] sm:$0xff] }
  0xe9   :  { %v1414_v24 = vmin.f32 %v1286_v20, 6.0  ;;  %v1446_v25 = vmin.f32 %v1318_v21, 6.0  ;;  %v878_v26 = vpop.f32.mrf.mxu2  ;;  %v958_v27 = vpop.f32.mrf.mxu3  ;;  %v2165_v19 = vld [vmem:[%s2941_s0 + $0xf8] sm:$0xff] }
  0xea   :  { %v1605_v30 = vpack.c.bf16 %v1477_v22, %v1477_v22  ;;  %v1637_v31 = vpack.c.bf16 %v1509_v23, %v1509_v23  ;;  %v1090_v32 = vmul.f32 %v2409_v40, %v878_v26  ;;  %v1122_v33 = vmul.f32 %v2409_v40, %v958_v27  ;;  %v721_v34 = vpop.f32.mrf.mxu0  ;;  %v801_v35 = vpop.f32.mrf.mxu1  ;;  %v2181_v26 = vld [vmem:[%s2941_s0 + $0x178] sm:$0xff] }
  0xeb   :  { %v1542_v38 = vpack.c.bf16 %v1414_v24, %v1414_v24  ;;  %v1574_v39 = vpack.c.bf16 %v1446_v25, %v1446_v25  ;;  %v1027_v42 = vmul.f32 %v2409_v40, %v721_v34  ;;  %v1059_v43 = vmul.f32 %v2409_v40, %v801_v35  ;;  %v2197_v27 = vld [vmem:[%s2941_s0 + $0x1f8] sm:$0xff] }
  0xec   :  { %1734 = vst.msk [vmem:[#allocation2 + $0x128] sm:$0xf] %vm1659_vm3, %v1605_v30  ;;  %v1222_v44 = vadd.f32 %v2414_v41, %v1090_v32  ;;  %v1254_v45 = vadd.f32 %v2414_v41, %v1122_v33 }
  0xed   :  { %1766 = vst.msk [vmem:[#allocation2 + $0x1a8] sm:$0xf] %vm1659_vm3, %v1637_v31  ;;  %v1159_v46 = vadd.f32 %v2414_v41, %v1027_v42  ;;  %v1191_v47 = vadd.f32 %v2414_v41, %v1059_v43  ;;  %2084 = vmatmul.msk.bf16.gmra.mxu0 %vm482_vm2, %v2148_v28  ;;  %2100 = vmatmul.msk.bf16.gmra.mxu1 %vm482_vm2, %v2164_v29 }
  0xee   :  { %1671 = vst.msk [vmem:[#allocation2 + $0x2c] sm:$0xf] %vm1659_vm3, %v1542_v38  ;;  %v1350_v48 = vmax.f32 %v1222_v44, 0.0  ;;  %v1382_v49 = vmax.f32 %v1254_v45, 0.0  ;;  %2116 = vmatmul.msk.bf16.gmra.mxu2 %vm482_vm2, %v2180_v36  ;;  %2132 = vmatmul.msk.bf16.gmra.mxu3 %vm482_vm2, %v2196_v37 }
  0xef   :  { %1703 = vst.msk [vmem:[#allocation2 + $0xac] sm:$0xf] %vm1659_vm3, %v1574_v39  ;;  %v1287_v50 = vmax.f32 %v1159_v46, 0.0  ;;  %v1319_v51 = vmax.f32 %v1191_v47, 0.0 }
  0xf0   :  { %v1478_v52 = vmin.f32 %v1350_v48, 6.0  ;;  %v1510_v53 = vmin.f32 %v1382_v49, 6.0 }
  0xf1   :  { %v1415_v54 = vmin.f32 %v1287_v50, 6.0  ;;  %v1447_v55 = vmin.f32 %v1319_v51, 6.0  ;;  %v881_v56 = vpop.f32.mrf.mxu2  ;;  %v961_v57 = vpop.f32.mrf.mxu3 }
  0xf2   :  { %v1606_v58 = vpack.c.bf16 %v1478_v52, %v1478_v52  ;;  %v1638_v59 = vpack.c.bf16 %v1510_v53, %v1510_v53  ;;  %v1091_v60 = vmul.f32 %v2409_v40, %v881_v56  ;;  %v1123_v61 = vmul.f32 %v2409_v40, %v961_v57  ;;  %v723_v62 = vpop.f32.mrf.mxu0  ;;  %v803_v63 = vpop.f32.mrf.mxu1 }
  0xf3   :  { %v1543_v0 = vpack.c.bf16 %v1415_v54, %v1415_v54  ;;  %v1575_v1 = vpack.c.bf16 %v1447_v55, %v1447_v55  ;;  %v1028_v2 = vmul.f32 %v2409_v40, %v723_v62  ;;  %v1060_v3 = vmul.f32 %v2409_v40, %v803_v63 }
  0xf4   :  { %1735 = vst.msk [vmem:[#allocation2 + $0x12c] sm:$0xf] %vm1659_vm3, %v1606_v58  ;;  %v1223_v4 = vadd.f32 %v2414_v41, %v1091_v60  ;;  %v1255_v5 = vadd.f32 %v2414_v41, %v1123_v61 }
  0xf5   :  { %1767 = vst.msk [vmem:[#allocation2 + $0x1ac] sm:$0xf] %vm1659_vm3, %v1638_v59  ;;  %v1160_v6 = vadd.f32 %v2414_v41, %v1028_v2  ;;  %v1192_v7 = vadd.f32 %v2414_v41, %v1060_v3 }
  0xf6   :  { %1672 = vst.msk [vmem:[#allocation2 + $0x30] sm:$0xf] %vm1659_vm3, %v1543_v0  ;;  %v1351_v8 = vmax.f32 %v1223_v4, 0.0  ;;  %v1383_v9 = vmax.f32 %v1255_v5, 0.0 }
  0xf7   :  { %1704 = vst.msk [vmem:[#allocation2 + $0xb0] sm:$0xf] %vm1659_vm3, %v1575_v1  ;;  %v1288_v10 = vmax.f32 %v1160_v6, 0.0  ;;  %v1320_v11 = vmax.f32 %v1192_v7, 0.0 }
  0xf8   :  { %v1479_v12 = vmin.f32 %v1351_v8, 6.0  ;;  %v1511_v13 = vmin.f32 %v1383_v9, 6.0 }
  0xf9   :  { %v1416_v14 = vmin.f32 %v1288_v10, 6.0  ;;  %v1448_v15 = vmin.f32 %v1320_v11, 6.0  ;;  %v883_v16 = vpop.f32.mrf.mxu2  ;;  %v963_v17 = vpop.f32.mrf.mxu3 }
  0xfa   :  { %v1607_v20 = vpack.c.bf16 %v1479_v12, %v1479_v12  ;;  %v1639_v21 = vpack.c.bf16 %v1511_v13, %v1511_v13  ;;  %v1092_v22 = vmul.f32 %v2409_v40, %v883_v16  ;;  %v1124_v23 = vmul.f32 %v2409_v40, %v963_v17  ;;  %v726_v24 = vpop.f32.mrf.mxu0  ;;  %v806_v25 = vpop.f32.mrf.mxu1 }
  0xfb   :  { %v1544_v28 = vpack.c.bf16 %v1416_v14, %v1416_v14  ;;  %v1576_v29 = vpack.c.bf16 %v1448_v15, %v1448_v15  ;;  %v1029_v30 = vmul.f32 %v2409_v40, %v726_v24  ;;  %v1061_v31 = vmul.f32 %v2409_v40, %v806_v25 }
  0xfc   :  { %1736 = vst.msk [vmem:[#allocation2 + $0x130] sm:$0xf] %vm1659_vm3, %v1607_v20  ;;  %v1224_v32 = vadd.f32 %v2414_v41, %v1092_v22  ;;  %v1256_v33 = vadd.f32 %v2414_v41, %v1124_v23 }
  0xfd   :  { %1768 = vst.msk [vmem:[#allocation2 + $0x1b0] sm:$0xf] %vm1659_vm3, %v1639_v21  ;;  %v1161_v34 = vadd.f32 %v2414_v41, %v1029_v30  ;;  %v1193_v35 = vadd.f32 %v2414_v41, %v1061_v31  ;;  %2085 = vmatmul.msk.bf16.gmra.mxu0 %vm482_vm2, %v2149_v18  ;;  %2101 = vmatmul.msk.bf16.gmra.mxu1 %vm482_vm2, %v2165_v19 }
  0xfe   :  { %1673 = vst.msk [vmem:[#allocation2 + $0x34] sm:$0xf] %vm1659_vm3, %v1544_v28  ;;  %v1352_v36 = vmax.f32 %v1224_v32, 0.0  ;;  %v1384_v37 = vmax.f32 %v1256_v33, 0.0  ;;  %2117 = vmatmul.msk.bf16.gmra.mxu2 %vm482_vm2, %v2181_v26  ;;  %2133 = vmatmul.msk.bf16.gmra.mxu3 %vm482_vm2, %v2197_v27 }
  0xff   :  { %1705 = vst.msk [vmem:[#allocation2 + $0xb4] sm:$0xf] %vm1659_vm3, %v1576_v29  ;;  %v1289_v38 = vmax.f32 %v1161_v34, 0.0  ;;  %v1321_v39 = vmax.f32 %v1193_v35, 0.0 }
 0x100   :  { %v1480_v42 = vmin.f32 %v1352_v36, 6.0  ;;  %v1512_v43 = vmin.f32 %v1384_v37, 6.0 }
 0x101   :  { %v1417_v44 = vmin.f32 %v1289_v38, 6.0  ;;  %v1449_v45 = vmin.f32 %v1321_v39, 6.0  ;;  %v886_v46 = vpop.f32.mrf.mxu2  ;;  %v966_v47 = vpop.f32.mrf.mxu3 }
 0x102   :  { %v1608_v48 = vpack.c.bf16 %v1480_v42, %v1480_v42  ;;  %v1640_v49 = vpack.c.bf16 %v1512_v43, %v1512_v43  ;;  %v1093_v50 = vmul.f32 %v2409_v40, %v886_v46  ;;  %v1125_v51 = vmul.f32 %v2409_v40, %v966_v47  ;;  %v728_v52 = vpop.f32.mrf.mxu0  ;;  %v808_v53 = vpop.f32.mrf.mxu1  ;;  %v2751_v43 = vld [vmem:[%s2944_s3] ss:$0 sm:$0xff] }
 0x103   :  { %v1545_v54 = vpack.c.bf16 %v1417_v44, %v1417_v44  ;;  %v1577_v55 = vpack.c.bf16 %v1449_v45, %v1449_v45  ;;  %v1030_v56 = vmul.f32 %v2409_v40, %v728_v52  ;;  %v1062_v57 = vmul.f32 %v2409_v40, %v808_v53 }
 0x104   :  { %1737 = vst.msk [vmem:[#allocation2 + $0x134] sm:$0xf] %vm1659_vm3, %v1608_v48  ;;  %v1225_v58 = vadd.f32 %v2414_v41, %v1093_v50  ;;  %v1257_v59 = vadd.f32 %v2414_v41, %v1125_v51 }
 0x105   :  { %1769 = vst.msk [vmem:[#allocation2 + $0x1b4] sm:$0xf] %vm1659_vm3, %v1640_v49  ;;  %v1162_v60 = vadd.f32 %v2414_v41, %v1030_v56  ;;  %v1194_v61 = vadd.f32 %v2414_v41, %v1062_v57 }
 0x106   :  { %1674 = vst.msk [vmem:[#allocation2 + $0x38] sm:$0xf] %vm1659_vm3, %v1545_v54  ;;  %v1353_v62 = vmax.f32 %v1225_v58, 0.0  ;;  %v1385_v63 = vmax.f32 %v1257_v59, 0.0 }
 0x107   :  { %1706 = vst.msk [vmem:[#allocation2 + $0xb8] sm:$0xf] %vm1659_vm3, %v1577_v55  ;;  %v1290_v0 = vmax.f32 %v1162_v60, 0.0  ;;  %v1322_v1 = vmax.f32 %v1194_v61, 0.0 }
 0x108   :  { %v1481_v2 = vmin.f32 %v1353_v62, 6.0  ;;  %v1513_v3 = vmin.f32 %v1385_v63, 6.0 }
 0x109   :  { %v1418_v4 = vmin.f32 %v1290_v0, 6.0  ;;  %v1450_v5 = vmin.f32 %v1322_v1, 6.0  ;;  %v888_v6 = vpop.f32.mrf.mxu2  ;;  %v968_v7 = vpop.f32.mrf.mxu3 }
 0x10a   :  { %v1609_v8 = vpack.c.bf16 %v1481_v2, %v1481_v2  ;;  %v1641_v9 = vpack.c.bf16 %v1513_v3, %v1513_v3  ;;  %v1094_v10 = vmul.f32 %v2409_v40, %v888_v6  ;;  %v1126_v11 = vmul.f32 %v2409_v40, %v968_v7  ;;  %v731_v12 = vpop.f32.mrf.mxu0  ;;  %v811_v13 = vpop.f32.mrf.mxu1 }
 0x10b   :  { %v1546_v14 = vpack.c.bf16 %v1418_v4, %v1418_v4  ;;  %v1578_v15 = vpack.c.bf16 %v1450_v5, %v1450_v5  ;;  %v1031_v16 = vmul.f32 %v2409_v40, %v731_v12  ;;  %v1063_v17 = vmul.f32 %v2409_v40, %v811_v13 }
 0x10c   :  { %1738 = vst.msk [vmem:[#allocation2 + $0x138] sm:$0xf] %vm1659_vm3, %v1609_v8  ;;  %v1226_v18 = vadd.f32 %v2414_v41, %v1094_v10  ;;  %v1258_v19 = vadd.f32 %v2414_v41, %v1126_v11 }
 0x10d   :  { %1770 = vst.msk [vmem:[#allocation2 + $0x1b8] sm:$0xf] %vm1659_vm3, %v1641_v9  ;;  %v1163_v20 = vadd.f32 %v2414_v41, %v1031_v16  ;;  %v1195_v21 = vadd.f32 %v2414_v41, %v1063_v17  ;;  %v2741_v41 = vld [vmem:[%s2943_s2] ss:$0 sm:$0xff]  ;;  %s2241_s2 = smov [#allocation2]  }
 0x10e   :  { %1675 = vst.msk [vmem:[#allocation2 + $0x3c] sm:$0xf] %vm1659_vm3, %v1546_v14  ;;  %v1354_v22 = vmax.f32 %v1226_v18, 0.0  ;;  %v1386_v23 = vmax.f32 %v1258_v19, 0.0  ;;  %s1792_s3 = sshll.u32 %s2241_s2, 4  ;;  %s1793_s3 = int_to_ptr.vmem [resolvable:$true] %s1792_s3 }
 0x10f   :  { %1707 = vst.msk [vmem:[#allocation2 + $0xbc] sm:$0xf] %vm1659_vm3, %v1578_v15  ;;  %v1291_v24 = vmax.f32 %v1163_v20, 0.0  ;;  %v1323_v40 = vmax.f32 %v1195_v21, 0.0 }
 0x110   :  { %v1482_v25 = vmin.f32 %v1354_v22, 6.0  ;;  %v1514_v26 = vmin.f32 %v1386_v23, 6.0 }
 0x111   :  { %v1419_v27 = vmin.f32 %v1291_v24, 6.0  ;;  %v1451_v28 = vmin.f32 %v1323_v40, 6.0  ;;  %v891_v29 = vpop.f32.mrf.mxu2  ;;  %v971_v30 = vpop.f32.mrf.mxu3 }
 0x112   :  { %v1610_v31 = vpack.c.bf16 %v1482_v25, %v1482_v25  ;;  %v1642_v32 = vpack.c.bf16 %v1514_v26, %v1514_v26  ;;  %v1095_v33 = vmul.f32 %v2741_v41, %v891_v29  ;;  %v1127_v34 = vmul.f32 %v2741_v41, %v971_v30  ;;  %v733_v35 = vpop.f32.mrf.mxu0  ;;  %v813_v36 = vpop.f32.mrf.mxu1 }
 0x113   :  { %v1547_v37 = vpack.c.bf16 %v1419_v27, %v1419_v27  ;;  %v1579_v38 = vpack.c.bf16 %v1451_v28, %v1451_v28  ;;  %v1032_v39 = vmul.f32 %v2741_v41, %v733_v35  ;;  %v1064_v42 = vmul.f32 %v2741_v41, %v813_v36 }
 0x114   :  { %1739 = vst.msk [vmem:[#allocation2 + $0x13c] sm:$0xf] %vm1659_vm3, %v1610_v31  ;;  %v1227_v44 = vadd.f32 %v2751_v43, %v1095_v33  ;;  %v1259_v45 = vadd.f32 %v2751_v43, %v1127_v34 }
 0x115   :  { %1771 = vst.msk [vmem:[#allocation2 + $0x1bc] sm:$0xf] %vm1659_vm3, %v1642_v32  ;;  %v1164_v46 = vadd.f32 %v2751_v43, %v1032_v39  ;;  %v1196_v47 = vadd.f32 %v2751_v43, %v1064_v42 }
 0x116   :  { %1676 = vst.msk [vmem:[#allocation2 + $0x40] sm:$0xf] %vm1659_vm3, %v1547_v37  ;;  %v1355_v48 = vmax.f32 %v1227_v44, 0.0  ;;  %v1387_v49 = vmax.f32 %v1259_v45, 0.0 }
 0x117   :  { %1708 = vst.msk [vmem:[#allocation2 + $0xc0] sm:$0xf] %vm1659_vm3, %v1579_v38  ;;  %v1292_v50 = vmax.f32 %v1164_v46, 0.0  ;;  %v1324_v51 = vmax.f32 %v1196_v47, 0.0 }
 0x118   :  { %v1483_v52 = vmin.f32 %v1355_v48, 6.0  ;;  %v1515_v53 = vmin.f32 %v1387_v49, 6.0 }
 0x119   :  { %v1420_v54 = vmin.f32 %v1292_v50, 6.0  ;;  %v1452_v55 = vmin.f32 %v1324_v51, 6.0  ;;  %v893_v56 = vpop.f32.mrf.mxu2  ;;  %v973_v57 = vpop.f32.mrf.mxu3 }
 0x11a   :  { %v1611_v58 = vpack.c.bf16 %v1483_v52, %v1483_v52  ;;  %v1643_v59 = vpack.c.bf16 %v1515_v53, %v1515_v53  ;;  %v1096_v60 = vmul.f32 %v2741_v41, %v893_v56  ;;  %v1128_v61 = vmul.f32 %v2741_v41, %v973_v57  ;;  %v736_v62 = vpop.f32.mrf.mxu0  ;;  %v816_v63 = vpop.f32.mrf.mxu1 }
 0x11b   :  { %v1548_v0 = vpack.c.bf16 %v1420_v54, %v1420_v54  ;;  %v1580_v1 = vpack.c.bf16 %v1452_v55, %v1452_v55  ;;  %v1033_v2 = vmul.f32 %v2741_v41, %v736_v62  ;;  %v1065_v3 = vmul.f32 %v2741_v41, %v816_v63 }
 0x11c   :  { %1740 = vst.msk [vmem:[#allocation2 + $0x140] sm:$0xf] %vm1659_vm3, %v1611_v58  ;;  %v1228_v4 = vadd.f32 %v2751_v43, %v1096_v60  ;;  %v1260_v5 = vadd.f32 %v2751_v43, %v1128_v61 }
 0x11d   :  { %1772 = vst.msk [vmem:[#allocation2 + $0x1c0] sm:$0xf] %vm1659_vm3, %v1643_v59  ;;  %v1165_v6 = vadd.f32 %v2751_v43, %v1033_v2  ;;  %v1197_v7 = vadd.f32 %v2751_v43, %v1065_v3 }
 0x11e   :  { %1677 = vst.msk [vmem:[#allocation2 + $0x44] sm:$0xf] %vm1659_vm3, %v1548_v0  ;;  %v1356_v8 = vmax.f32 %v1228_v4, 0.0  ;;  %v1388_v9 = vmax.f32 %v1260_v5, 0.0 }
 0x11f   :  { %1709 = vst.msk [vmem:[#allocation2 + $0xc4] sm:$0xf] %vm1659_vm3, %v1580_v1  ;;  %v1293_v10 = vmax.f32 %v1165_v6, 0.0  ;;  %v1325_v11 = vmax.f32 %v1197_v7, 0.0 }
 0x120   :  { %v1484_v12 = vmin.f32 %v1356_v8, 6.0  ;;  %v1516_v13 = vmin.f32 %v1388_v9, 6.0 }
 0x121   :  { %v1421_v14 = vmin.f32 %v1293_v10, 6.0  ;;  %v1453_v15 = vmin.f32 %v1325_v11, 6.0  ;;  %v896_v16 = vpop.f32.mrf.mxu2  ;;  %v976_v17 = vpop.f32.mrf.mxu3 }
 0x122   :  { %v1612_v18 = vpack.c.bf16 %v1484_v12, %v1484_v12  ;;  %v1644_v19 = vpack.c.bf16 %v1516_v13, %v1516_v13  ;;  %v1097_v20 = vmul.f32 %v2741_v41, %v896_v16  ;;  %v1129_v21 = vmul.f32 %v2741_v41, %v976_v17  ;;  %v738_v22 = vpop.f32.mrf.mxu0  ;;  %v818_v23 = vpop.f32.mrf.mxu1 }
 0x123   :  { %v1549_v24 = vpack.c.bf16 %v1421_v14, %v1421_v14  ;;  %v1581_v40 = vpack.c.bf16 %v1453_v15, %v1453_v15  ;;  %v1034_v25 = vmul.f32 %v2741_v41, %v738_v22  ;;  %v1066_v26 = vmul.f32 %v2741_v41, %v818_v23 }
 0x124   :  { %1741 = vst.msk [vmem:[#allocation2 + $0x144] sm:$0xf] %vm1659_vm3, %v1612_v18  ;;  %v1229_v27 = vadd.f32 %v2751_v43, %v1097_v20  ;;  %v1261_v28 = vadd.f32 %v2751_v43, %v1129_v21 }
 0x125   :  { %1773 = vst.msk [vmem:[#allocation2 + $0x1c4] sm:$0xf] %vm1659_vm3, %v1644_v19  ;;  %v1166_v29 = vadd.f32 %v2751_v43, %v1034_v25  ;;  %v1198_v30 = vadd.f32 %v2751_v43, %v1066_v26 }
 0x126   :  { %1678 = vst.msk [vmem:[#allocation2 + $0x48] sm:$0xf] %vm1659_vm3, %v1549_v24  ;;  %v1357_v31 = vmax.f32 %v1229_v27, 0.0  ;;  %v1389_v32 = vmax.f32 %v1261_v28, 0.0 }
 0x127   :  { %1710 = vst.msk [vmem:[#allocation2 + $0xc8] sm:$0xf] %vm1659_vm3, %v1581_v40  ;;  %v1294_v33 = vmax.f32 %v1166_v29, 0.0  ;;  %v1326_v34 = vmax.f32 %v1198_v30, 0.0 }
 0x128   :  { %v1485_v35 = vmin.f32 %v1357_v31, 6.0  ;;  %v1517_v36 = vmin.f32 %v1389_v32, 6.0 }
 0x129   :  { %v1422_v37 = vmin.f32 %v1294_v33, 6.0  ;;  %v1454_v38 = vmin.f32 %v1326_v34, 6.0  ;;  %v898_v39 = vpop.f32.mrf.mxu2  ;;  %v978_v42 = vpop.f32.mrf.mxu3 }
 0x12a   :  { %v1613_v44 = vpack.c.bf16 %v1485_v35, %v1485_v35  ;;  %v1645_v45 = vpack.c.bf16 %v1517_v36, %v1517_v36  ;;  %v1098_v46 = vmul.f32 %v2741_v41, %v898_v39  ;;  %v1130_v47 = vmul.f32 %v2741_v41, %v978_v42  ;;  %v741_v48 = vpop.f32.mrf.mxu0  ;;  %v821_v49 = vpop.f32.mrf.mxu1 }
 0x12b   :  { %v1550_v50 = vpack.c.bf16 %v1422_v37, %v1422_v37  ;;  %v1582_v51 = vpack.c.bf16 %v1454_v38, %v1454_v38  ;;  %v1035_v52 = vmul.f32 %v2741_v41, %v741_v48  ;;  %v1067_v53 = vmul.f32 %v2741_v41, %v821_v49 }
 0x12c   :  { %1742 = vst.msk [vmem:[#allocation2 + $0x148] sm:$0xf] %vm1659_vm3, %v1613_v44  ;;  %v1230_v54 = vadd.f32 %v2751_v43, %v1098_v46  ;;  %v1262_v55 = vadd.f32 %v2751_v43, %v1130_v47 }
 0x12d   :  { %1774 = vst.msk [vmem:[#allocation2 + $0x1c8] sm:$0xf] %vm1659_vm3, %v1645_v45  ;;  %v1167_v56 = vadd.f32 %v2751_v43, %v1035_v52  ;;  %v1199_v57 = vadd.f32 %v2751_v43, %v1067_v53 }
 0x12e   :  { %1679 = vst.msk [vmem:[#allocation2 + $0x4c] sm:$0xf] %vm1659_vm3, %v1550_v50  ;;  %v1358_v58 = vmax.f32 %v1230_v54, 0.0  ;;  %v1390_v59 = vmax.f32 %v1262_v55, 0.0 }
 0x12f   :  { %1711 = vst.msk [vmem:[#allocation2 + $0xcc] sm:$0xf] %vm1659_vm3, %v1582_v51  ;;  %v1295_v60 = vmax.f32 %v1167_v56, 0.0  ;;  %v1327_v61 = vmax.f32 %v1199_v57, 0.0 }
 0x130   :  { %v1486_v62 = vmin.f32 %v1358_v58, 6.0  ;;  %v1518_v63 = vmin.f32 %v1390_v59, 6.0 }
 0x131   :  { %v1423_v0 = vmin.f32 %v1295_v60, 6.0  ;;  %v1455_v1 = vmin.f32 %v1327_v61, 6.0  ;;  %v901_v2 = vpop.f32.mrf.mxu2  ;;  %v981_v3 = vpop.f32.mrf.mxu3 }
 0x132   :  { %v1614_v4 = vpack.c.bf16 %v1486_v62, %v1486_v62  ;;  %v1646_v5 = vpack.c.bf16 %v1518_v63, %v1518_v63  ;;  %v1099_v6 = vmul.f32 %v2741_v41, %v901_v2  ;;  %v1131_v7 = vmul.f32 %v2741_v41, %v981_v3  ;;  %v743_v8 = vpop.f32.mrf.mxu0  ;;  %v823_v9 = vpop.f32.mrf.mxu1 }
 0x133   :  { %v1551_v10 = vpack.c.bf16 %v1423_v0, %v1423_v0  ;;  %v1583_v11 = vpack.c.bf16 %v1455_v1, %v1455_v1  ;;  %v1036_v12 = vmul.f32 %v2741_v41, %v743_v8  ;;  %v1068_v13 = vmul.f32 %v2741_v41, %v823_v9 }
 0x134   :  { %1743 = vst.msk [vmem:[#allocation2 + $0x14c] sm:$0xf] %vm1659_vm3, %v1614_v4  ;;  %v1231_v14 = vadd.f32 %v2751_v43, %v1099_v6  ;;  %v1263_v15 = vadd.f32 %v2751_v43, %v1131_v7 }
 0x135   :  { %1775 = vst.msk [vmem:[#allocation2 + $0x1cc] sm:$0xf] %vm1659_vm3, %v1646_v5  ;;  %v1168_v16 = vadd.f32 %v2751_v43, %v1036_v12  ;;  %v1200_v17 = vadd.f32 %v2751_v43, %v1068_v13 }
 0x136   :  { %1680 = vst.msk [vmem:[#allocation2 + $0x50] sm:$0xf] %vm1659_vm3, %v1551_v10  ;;  %v1359_v18 = vmax.f32 %v1231_v14, 0.0  ;;  %v1391_v19 = vmax.f32 %v1263_v15, 0.0 }
 0x137   :  { %1712 = vst.msk [vmem:[#allocation2 + $0xd0] sm:$0xf] %vm1659_vm3, %v1583_v11  ;;  %v1296_v20 = vmax.f32 %v1168_v16, 0.0  ;;  %v1328_v21 = vmax.f32 %v1200_v17, 0.0 }
 0x138   :  { %v1487_v22 = vmin.f32 %v1359_v18, 6.0  ;;  %v1519_v23 = vmin.f32 %v1391_v19, 6.0 }
 0x139   :  { %v1424_v24 = vmin.f32 %v1296_v20, 6.0  ;;  %v1456_v40 = vmin.f32 %v1328_v21, 6.0  ;;  %v903_v25 = vpop.f32.mrf.mxu2  ;;  %v983_v26 = vpop.f32.mrf.mxu3 }
 0x13a   :  { %v1615_v27 = vpack.c.bf16 %v1487_v22, %v1487_v22  ;;  %v1647_v28 = vpack.c.bf16 %v1519_v23, %v1519_v23  ;;  %v1100_v29 = vmul.f32 %v2741_v41, %v903_v25  ;;  %v1132_v30 = vmul.f32 %v2741_v41, %v983_v26  ;;  %v746_v31 = vpop.f32.mrf.mxu0  ;;  %v826_v32 = vpop.f32.mrf.mxu1 }
 0x13b   :  { %v1552_v33 = vpack.c.bf16 %v1424_v24, %v1424_v24  ;;  %v1584_v34 = vpack.c.bf16 %v1456_v40, %v1456_v40  ;;  %v1037_v35 = vmul.f32 %v2741_v41, %v746_v31  ;;  %v1069_v36 = vmul.f32 %v2741_v41, %v826_v32 }
 0x13c   :  { %1744 = vst.msk [vmem:[#allocation2 + $0x150] sm:$0xf] %vm1659_vm3, %v1615_v27  ;;  %v1232_v37 = vadd.f32 %v2751_v43, %v1100_v29  ;;  %v1264_v38 = vadd.f32 %v2751_v43, %v1132_v30 }
 0x13d   :  { %1776 = vst.msk [vmem:[#allocation2 + $0x1d0] sm:$0xf] %vm1659_vm3, %v1647_v28  ;;  %v1169_v39 = vadd.f32 %v2751_v43, %v1037_v35  ;;  %v1201_v42 = vadd.f32 %v2751_v43, %v1069_v36 }
 0x13e   :  { %1681 = vst.msk [vmem:[#allocation2 + $0x54] sm:$0xf] %vm1659_vm3, %v1552_v33  ;;  %v1360_v44 = vmax.f32 %v1232_v37, 0.0  ;;  %v1392_v45 = vmax.f32 %v1264_v38, 0.0 }
 0x13f   :  { %1713 = vst.msk [vmem:[#allocation2 + $0xd4] sm:$0xf] %vm1659_vm3, %v1584_v34  ;;  %v1297_v46 = vmax.f32 %v1169_v39, 0.0  ;;  %v1329_v47 = vmax.f32 %v1201_v42, 0.0 }
 0x140   :  { %v1488_v48 = vmin.f32 %v1360_v44, 6.0  ;;  %v1520_v49 = vmin.f32 %v1392_v45, 6.0 }
 0x141   :  { %v1425_v50 = vmin.f32 %v1297_v46, 6.0  ;;  %v1457_v51 = vmin.f32 %v1329_v47, 6.0  ;;  %v906_v52 = vpop.f32.mrf.mxu2  ;;  %v986_v53 = vpop.f32.mrf.mxu3 }
 0x142   :  { %v1616_v54 = vpack.c.bf16 %v1488_v48, %v1488_v48  ;;  %v1648_v55 = vpack.c.bf16 %v1520_v49, %v1520_v49  ;;  %v1101_v56 = vmul.f32 %v2741_v41, %v906_v52  ;;  %v1133_v57 = vmul.f32 %v2741_v41, %v986_v53  ;;  %v748_v58 = vpop.f32.mrf.mxu0  ;;  %v828_v59 = vpop.f32.mrf.mxu1 }
 0x143   :  { %v1553_v60 = vpack.c.bf16 %v1425_v50, %v1425_v50  ;;  %v1585_v61 = vpack.c.bf16 %v1457_v51, %v1457_v51  ;;  %v1038_v62 = vmul.f32 %v2741_v41, %v748_v58  ;;  %v1070_v63 = vmul.f32 %v2741_v41, %v828_v59 }
 0x144   :  { %1745 = vst.msk [vmem:[#allocation2 + $0x154] sm:$0xf] %vm1659_vm3, %v1616_v54  ;;  %v1233_v0 = vadd.f32 %v2751_v43, %v1101_v56  ;;  %v1265_v1 = vadd.f32 %v2751_v43, %v1133_v57 }
 0x145   :  { %1777 = vst.msk [vmem:[#allocation2 + $0x1d4] sm:$0xf] %vm1659_vm3, %v1648_v55  ;;  %v1170_v2 = vadd.f32 %v2751_v43, %v1038_v62  ;;  %v1202_v3 = vadd.f32 %v2751_v43, %v1070_v63 }
 0x146   :  { %1682 = vst.msk [vmem:[#allocation2 + $0x58] sm:$0xf] %vm1659_vm3, %v1553_v60  ;;  %v1361_v4 = vmax.f32 %v1233_v0, 0.0  ;;  %v1393_v5 = vmax.f32 %v1265_v1, 0.0 }
 0x147   :  { %1714 = vst.msk [vmem:[#allocation2 + $0xd8] sm:$0xf] %vm1659_vm3, %v1585_v61  ;;  %v1298_v6 = vmax.f32 %v1170_v2, 0.0  ;;  %v1330_v7 = vmax.f32 %v1202_v3, 0.0 }
 0x148   :  { %v1489_v8 = vmin.f32 %v1361_v4, 6.0  ;;  %v1521_v9 = vmin.f32 %v1393_v5, 6.0 }
 0x149   :  { %v1426_v10 = vmin.f32 %v1298_v6, 6.0  ;;  %v1458_v11 = vmin.f32 %v1330_v7, 6.0  ;;  %v908_v12 = vpop.f32.mrf.mxu2  ;;  %v988_v13 = vpop.f32.mrf.mxu3 }
 0x14a   :  { %v1617_v14 = vpack.c.bf16 %v1489_v8, %v1489_v8  ;;  %v1649_v15 = vpack.c.bf16 %v1521_v9, %v1521_v9  ;;  %v1102_v16 = vmul.f32 %v2741_v41, %v908_v12  ;;  %v1134_v17 = vmul.f32 %v2741_v41, %v988_v13  ;;  %v751_v18 = vpop.f32.mrf.mxu0  ;;  %v831_v19 = vpop.f32.mrf.mxu1 }
 0x14b   :  { %v1554_v20 = vpack.c.bf16 %v1426_v10, %v1426_v10  ;;  %v1586_v21 = vpack.c.bf16 %v1458_v11, %v1458_v11  ;;  %v1039_v22 = vmul.f32 %v2741_v41, %v751_v18  ;;  %v1071_v23 = vmul.f32 %v2741_v41, %v831_v19 }
 0x14c   :  { %1746 = vst.msk [vmem:[#allocation2 + $0x158] sm:$0xf] %vm1659_vm3, %v1617_v14  ;;  %v1234_v24 = vadd.f32 %v2751_v43, %v1102_v16  ;;  %v1266_v40 = vadd.f32 %v2751_v43, %v1134_v17 }
 0x14d   :  { %1778 = vst.msk [vmem:[#allocation2 + $0x1d8] sm:$0xf] %vm1659_vm3, %v1649_v15  ;;  %v1171_v25 = vadd.f32 %v2751_v43, %v1039_v22  ;;  %v1203_v26 = vadd.f32 %v2751_v43, %v1071_v23 }
 0x14e   :  { %1683 = vst.msk [vmem:[#allocation2 + $0x5c] sm:$0xf] %vm1659_vm3, %v1554_v20  ;;  %v1362_v27 = vmax.f32 %v1234_v24, 0.0  ;;  %v1394_v28 = vmax.f32 %v1266_v40, 0.0 }
 0x14f   :  { %1715 = vst.msk [vmem:[#allocation2 + $0xdc] sm:$0xf] %vm1659_vm3, %v1586_v21  ;;  %v1299_v29 = vmax.f32 %v1171_v25, 0.0  ;;  %v1331_v30 = vmax.f32 %v1203_v26, 0.0 }
 0x150   :  { %v1490_v31 = vmin.f32 %v1362_v27, 6.0  ;;  %v1522_v32 = vmin.f32 %v1394_v28, 6.0 }
 0x151   :  { %v1427_v33 = vmin.f32 %v1299_v29, 6.0  ;;  %v1459_v34 = vmin.f32 %v1331_v30, 6.0  ;;  %v911_v35 = vpop.f32.mrf.mxu2  ;;  %v991_v36 = vpop.f32.mrf.mxu3 }
 0x152   :  { %v1618_v37 = vpack.c.bf16 %v1490_v31, %v1490_v31  ;;  %v1650_v38 = vpack.c.bf16 %v1522_v32, %v1522_v32  ;;  %v1103_v39 = vmul.f32 %v2741_v41, %v911_v35  ;;  %v1135_v42 = vmul.f32 %v2741_v41, %v991_v36  ;;  %v753_v44 = vpop.f32.mrf.mxu0  ;;  %v833_v45 = vpop.f32.mrf.mxu1 }
 0x153   :  { %v1555_v46 = vpack.c.bf16 %v1427_v33, %v1427_v33  ;;  %v1587_v47 = vpack.c.bf16 %v1459_v34, %v1459_v34  ;;  %v1040_v48 = vmul.f32 %v2741_v41, %v753_v44  ;;  %v1072_v49 = vmul.f32 %v2741_v41, %v833_v45 }
 0x154   :  { %1747 = vst.msk [vmem:[#allocation2 + $0x15c] sm:$0xf] %vm1659_vm3, %v1618_v37  ;;  %v1235_v50 = vadd.f32 %v2751_v43, %v1103_v39  ;;  %v1267_v51 = vadd.f32 %v2751_v43, %v1135_v42 }
 0x155   :  { %1779 = vst.msk [vmem:[#allocation2 + $0x1dc] sm:$0xf] %vm1659_vm3, %v1650_v38  ;;  %v1172_v52 = vadd.f32 %v2751_v43, %v1040_v48  ;;  %v1204_v53 = vadd.f32 %v2751_v43, %v1072_v49 }
 0x156   :  { %1684 = vst.msk [vmem:[#allocation2 + $0x60] sm:$0xf] %vm1659_vm3, %v1555_v46  ;;  %v1363_v54 = vmax.f32 %v1235_v50, 0.0  ;;  %v1395_v55 = vmax.f32 %v1267_v51, 0.0 }
 0x157   :  { %1716 = vst.msk [vmem:[#allocation2 + $0xe0] sm:$0xf] %vm1659_vm3, %v1587_v47  ;;  %v1300_v56 = vmax.f32 %v1172_v52, 0.0  ;;  %v1332_v57 = vmax.f32 %v1204_v53, 0.0 }
 0x158   :  { %v1491_v58 = vmin.f32 %v1363_v54, 6.0  ;;  %v1523_v59 = vmin.f32 %v1395_v55, 6.0 }
 0x159   :  { %v1428_v60 = vmin.f32 %v1300_v56, 6.0  ;;  %v1460_v61 = vmin.f32 %v1332_v57, 6.0  ;;  %v913_v62 = vpop.f32.mrf.mxu2  ;;  %v993_v63 = vpop.f32.mrf.mxu3 }
 0x15a   :  { %v1619_v0 = vpack.c.bf16 %v1491_v58, %v1491_v58  ;;  %v1651_v1 = vpack.c.bf16 %v1523_v59, %v1523_v59  ;;  %v1104_v2 = vmul.f32 %v2741_v41, %v913_v62  ;;  %v1136_v3 = vmul.f32 %v2741_v41, %v993_v63  ;;  %v756_v4 = vpop.f32.mrf.mxu0  ;;  %v836_v5 = vpop.f32.mrf.mxu1 }
 0x15b   :  { %v1556_v6 = vpack.c.bf16 %v1428_v60, %v1428_v60  ;;  %v1588_v7 = vpack.c.bf16 %v1460_v61, %v1460_v61  ;;  %v1041_v8 = vmul.f32 %v2741_v41, %v756_v4  ;;  %v1073_v9 = vmul.f32 %v2741_v41, %v836_v5 }
 0x15c   :  { %1748 = vst.msk [vmem:[#allocation2 + $0x160] sm:$0xf] %vm1659_vm3, %v1619_v0  ;;  %v1236_v10 = vadd.f32 %v2751_v43, %v1104_v2  ;;  %v1268_v11 = vadd.f32 %v2751_v43, %v1136_v3 }
 0x15d   :  { %1780 = vst.msk [vmem:[#allocation2 + $0x1e0] sm:$0xf] %vm1659_vm3, %v1651_v1  ;;  %v1173_v12 = vadd.f32 %v2751_v43, %v1041_v8  ;;  %v1205_v13 = vadd.f32 %v2751_v43, %v1073_v9 }
 0x15e   :  { %1685 = vst.msk [vmem:[#allocation2 + $0x64] sm:$0xf] %vm1659_vm3, %v1556_v6  ;;  %v1364_v14 = vmax.f32 %v1236_v10, 0.0  ;;  %v1396_v15 = vmax.f32 %v1268_v11, 0.0 }
 0x15f   :  { %1717 = vst.msk [vmem:[#allocation2 + $0xe4] sm:$0xf] %vm1659_vm3, %v1588_v7  ;;  %v1301_v16 = vmax.f32 %v1173_v12, 0.0  ;;  %v1333_v17 = vmax.f32 %v1205_v13, 0.0 }
 0x160   :  { %v1492_v18 = vmin.f32 %v1364_v14, 6.0  ;;  %v1524_v19 = vmin.f32 %v1396_v15, 6.0 }
 0x161   :  { %v1429_v20 = vmin.f32 %v1301_v16, 6.0  ;;  %v1461_v21 = vmin.f32 %v1333_v17, 6.0  ;;  %v916_v22 = vpop.f32.mrf.mxu2  ;;  %v996_v23 = vpop.f32.mrf.mxu3 }
 0x162   :  { %v1620_v24 = vpack.c.bf16 %v1492_v18, %v1492_v18  ;;  %v1652_v40 = vpack.c.bf16 %v1524_v19, %v1524_v19  ;;  %v1105_v25 = vmul.f32 %v2741_v41, %v916_v22  ;;  %v1137_v26 = vmul.f32 %v2741_v41, %v996_v23  ;;  %v758_v27 = vpop.f32.mrf.mxu0  ;;  %v838_v28 = vpop.f32.mrf.mxu1 }
 0x163   :  { %v1557_v29 = vpack.c.bf16 %v1429_v20, %v1429_v20  ;;  %v1589_v30 = vpack.c.bf16 %v1461_v21, %v1461_v21  ;;  %v1042_v31 = vmul.f32 %v2741_v41, %v758_v27  ;;  %v1074_v32 = vmul.f32 %v2741_v41, %v838_v28 }
 0x164   :  { %1749 = vst.msk [vmem:[#allocation2 + $0x164] sm:$0xf] %vm1659_vm3, %v1620_v24  ;;  %v1237_v33 = vadd.f32 %v2751_v43, %v1105_v25  ;;  %v1269_v34 = vadd.f32 %v2751_v43, %v1137_v26 }
 0x165   :  { %1781 = vst.msk [vmem:[#allocation2 + $0x1e4] sm:$0xf] %vm1659_vm3, %v1652_v40  ;;  %v1174_v35 = vadd.f32 %v2751_v43, %v1042_v31  ;;  %v1206_v36 = vadd.f32 %v2751_v43, %v1074_v32 }
 0x166   :  { %1686 = vst.msk [vmem:[#allocation2 + $0x68] sm:$0xf] %vm1659_vm3, %v1557_v29  ;;  %v1365_v37 = vmax.f32 %v1237_v33, 0.0  ;;  %v1397_v38 = vmax.f32 %v1269_v34, 0.0 }
 0x167   :  { %1718 = vst.msk [vmem:[#allocation2 + $0xe8] sm:$0xf] %vm1659_vm3, %v1589_v30  ;;  %v1302_v39 = vmax.f32 %v1174_v35, 0.0  ;;  %v1334_v42 = vmax.f32 %v1206_v36, 0.0 }
 0x168   :  { %v1493_v44 = vmin.f32 %v1365_v37, 6.0  ;;  %v1525_v45 = vmin.f32 %v1397_v38, 6.0 }
 0x169   :  { %v1430_v46 = vmin.f32 %v1302_v39, 6.0  ;;  %v1462_v47 = vmin.f32 %v1334_v42, 6.0  ;;  %v918_v48 = vpop.f32.mrf.mxu2  ;;  %v998_v49 = vpop.f32.mrf.mxu3 }
 0x16a   :  { %v1621_v50 = vpack.c.bf16 %v1493_v44, %v1493_v44  ;;  %v1653_v51 = vpack.c.bf16 %v1525_v45, %v1525_v45  ;;  %v1106_v52 = vmul.f32 %v2741_v41, %v918_v48  ;;  %v1138_v53 = vmul.f32 %v2741_v41, %v998_v49  ;;  %v761_v54 = vpop.f32.mrf.mxu0  ;;  %v841_v55 = vpop.f32.mrf.mxu1 }
 0x16b   :  { %v1558_v56 = vpack.c.bf16 %v1430_v46, %v1430_v46  ;;  %v1590_v57 = vpack.c.bf16 %v1462_v47, %v1462_v47  ;;  %v1043_v58 = vmul.f32 %v2741_v41, %v761_v54  ;;  %v1075_v59 = vmul.f32 %v2741_v41, %v841_v55 }
 0x16c   :  { %1750 = vst.msk [vmem:[#allocation2 + $0x168] sm:$0xf] %vm1659_vm3, %v1621_v50  ;;  %v1238_v60 = vadd.f32 %v2751_v43, %v1106_v52  ;;  %v1270_v61 = vadd.f32 %v2751_v43, %v1138_v53 }
 0x16d   :  { %1782 = vst.msk [vmem:[#allocation2 + $0x1e8] sm:$0xf] %vm1659_vm3, %v1653_v51  ;;  %v1175_v62 = vadd.f32 %v2751_v43, %v1043_v58  ;;  %v1207_v63 = vadd.f32 %v2751_v43, %v1075_v59 }
 0x16e   :  { %1687 = vst.msk [vmem:[#allocation2 + $0x6c] sm:$0xf] %vm1659_vm3, %v1558_v56  ;;  %v1366_v0 = vmax.f32 %v1238_v60, 0.0  ;;  %v1398_v1 = vmax.f32 %v1270_v61, 0.0 }
 0x16f   :  { %1719 = vst.msk [vmem:[#allocation2 + $0xec] sm:$0xf] %vm1659_vm3, %v1590_v57  ;;  %v1303_v2 = vmax.f32 %v1175_v62, 0.0  ;;  %v1335_v3 = vmax.f32 %v1207_v63, 0.0 }
 0x170   :  { %v1494_v4 = vmin.f32 %v1366_v0, 6.0  ;;  %v1526_v5 = vmin.f32 %v1398_v1, 6.0 }
 0x171   :  { %v1431_v6 = vmin.f32 %v1303_v2, 6.0  ;;  %v1463_v7 = vmin.f32 %v1335_v3, 6.0  ;;  %v921_v8 = vpop.f32.mrf.mxu2  ;;  %v1001_v9 = vpop.f32.mrf.mxu3 }
 0x172   :  { %v1622_v10 = vpack.c.bf16 %v1494_v4, %v1494_v4  ;;  %v1654_v11 = vpack.c.bf16 %v1526_v5, %v1526_v5  ;;  %v1107_v12 = vmul.f32 %v2741_v41, %v921_v8  ;;  %v1139_v13 = vmul.f32 %v2741_v41, %v1001_v9  ;;  %v763_v14 = vpop.f32.mrf.mxu0  ;;  %v843_v15 = vpop.f32.mrf.mxu1 }
 0x173   :  { %v1559_v16 = vpack.c.bf16 %v1431_v6, %v1431_v6  ;;  %v1591_v17 = vpack.c.bf16 %v1463_v7, %v1463_v7  ;;  %v1044_v18 = vmul.f32 %v2741_v41, %v763_v14  ;;  %v1076_v19 = vmul.f32 %v2741_v41, %v843_v15 }
 0x174   :  { %1751 = vst.msk [vmem:[#allocation2 + $0x16c] sm:$0xf] %vm1659_vm3, %v1622_v10  ;;  %v1239_v20 = vadd.f32 %v2751_v43, %v1107_v12  ;;  %v1271_v21 = vadd.f32 %v2751_v43, %v1139_v13 }
 0x175   :  { %1783 = vst.msk [vmem:[#allocation2 + $0x1ec] sm:$0xf] %vm1659_vm3, %v1654_v11  ;;  %v1176_v22 = vadd.f32 %v2751_v43, %v1044_v18  ;;  %v1208_v23 = vadd.f32 %v2751_v43, %v1076_v19 }
 0x176   :  { %1688 = vst.msk [vmem:[#allocation2 + $0x70] sm:$0xf] %vm1659_vm3, %v1559_v16  ;;  %v1367_v24 = vmax.f32 %v1239_v20, 0.0  ;;  %v1399_v40 = vmax.f32 %v1271_v21, 0.0 }
 0x177   :  { %1720 = vst.msk [vmem:[#allocation2 + $0xf0] sm:$0xf] %vm1659_vm3, %v1591_v17  ;;  %v1304_v25 = vmax.f32 %v1176_v22, 0.0  ;;  %v1336_v26 = vmax.f32 %v1208_v23, 0.0 }
 0x178   :  { %v1495_v27 = vmin.f32 %v1367_v24, 6.0  ;;  %v1527_v28 = vmin.f32 %v1399_v40, 6.0 }
 0x179   :  { %v1432_v29 = vmin.f32 %v1304_v25, 6.0  ;;  %v1464_v30 = vmin.f32 %v1336_v26, 6.0  ;;  %v923_v31 = vpop.f32.mrf.mxu2  ;;  %v1003_v32 = vpop.f32.mrf.mxu3 }
 0x17a   :  { %v1623_v33 = vpack.c.bf16 %v1495_v27, %v1495_v27  ;;  %v1655_v34 = vpack.c.bf16 %v1527_v28, %v1527_v28  ;;  %v1108_v35 = vmul.f32 %v2741_v41, %v923_v31  ;;  %v1140_v36 = vmul.f32 %v2741_v41, %v1003_v32  ;;  %v766_v37 = vpop.f32.mrf.mxu0  ;;  %v846_v38 = vpop.f32.mrf.mxu1 }
 0x17b   :  { %v1560_v39 = vpack.c.bf16 %v1432_v29, %v1432_v29  ;;  %v1592_v42 = vpack.c.bf16 %v1464_v30, %v1464_v30  ;;  %v1045_v44 = vmul.f32 %v2741_v41, %v766_v37  ;;  %v1077_v45 = vmul.f32 %v2741_v41, %v846_v38 }
 0x17c   :  { %1752 = vst.msk [vmem:[#allocation2 + $0x170] sm:$0xf] %vm1659_vm3, %v1623_v33  ;;  %v1240_v46 = vadd.f32 %v2751_v43, %v1108_v35  ;;  %v1272_v47 = vadd.f32 %v2751_v43, %v1140_v36 }
 0x17d   :  { %1784 = vst.msk [vmem:[#allocation2 + $0x1f0] sm:$0xf] %vm1659_vm3, %v1655_v34  ;;  %v1177_v48 = vadd.f32 %v2751_v43, %v1045_v44  ;;  %v1209_v49 = vadd.f32 %v2751_v43, %v1077_v45 }
 0x17e   :  { %1689 = vst.msk [vmem:[#allocation2 + $0x74] sm:$0xf] %vm1659_vm3, %v1560_v39  ;;  %v1368_v50 = vmax.f32 %v1240_v46, 0.0  ;;  %v1400_v51 = vmax.f32 %v1272_v47, 0.0 }
 0x17f   :  { %1721 = vst.msk [vmem:[#allocation2 + $0xf4] sm:$0xf] %vm1659_vm3, %v1592_v42  ;;  %v1305_v52 = vmax.f32 %v1177_v48, 0.0  ;;  %v1337_v53 = vmax.f32 %v1209_v49, 0.0 }
 0x180   :  { %v1496_v54 = vmin.f32 %v1368_v50, 6.0  ;;  %v1528_v55 = vmin.f32 %v1400_v51, 6.0 }
 0x181   :  { %v1433_v56 = vmin.f32 %v1305_v52, 6.0  ;;  %v1465_v57 = vmin.f32 %v1337_v53, 6.0  ;;  %v926_v58 = vpop.f32.mrf.mxu2  ;;  %v1006_v59 = vpop.f32.mrf.mxu3 }
 0x182   :  { %v1624_v60 = vpack.c.bf16 %v1496_v54, %v1496_v54  ;;  %v1656_v61 = vpack.c.bf16 %v1528_v55, %v1528_v55  ;;  %v1109_v62 = vmul.f32 %v2741_v41, %v926_v58  ;;  %v1141_v63 = vmul.f32 %v2741_v41, %v1006_v59  ;;  %v768_v0 = vpop.f32.mrf.mxu0  ;;  %v848_v1 = vpop.f32.mrf.mxu1 }
 0x183   :  { %v1561_v2 = vpack.c.bf16 %v1433_v56, %v1433_v56  ;;  %v1593_v3 = vpack.c.bf16 %v1465_v57, %v1465_v57  ;;  %v1046_v4 = vmul.f32 %v2741_v41, %v768_v0  ;;  %v1078_v5 = vmul.f32 %v2741_v41, %v848_v1 }
 0x184   :  { %1753 = vst.msk [vmem:[#allocation2 + $0x174] sm:$0xf] %vm1659_vm3, %v1624_v60  ;;  %v1241_v6 = vadd.f32 %v2751_v43, %v1109_v62  ;;  %v1273_v7 = vadd.f32 %v2751_v43, %v1141_v63 }
 0x185   :  { %1785 = vst.msk [vmem:[#allocation2 + $0x1f4] sm:$0xf] %vm1659_vm3, %v1656_v61  ;;  %v1178_v8 = vadd.f32 %v2751_v43, %v1046_v4  ;;  %v1210_v9 = vadd.f32 %v2751_v43, %v1078_v5 }
 0x186   :  { %1690 = vst.msk [vmem:[#allocation2 + $0x78] sm:$0xf] %vm1659_vm3, %v1561_v2  ;;  %v1369_v10 = vmax.f32 %v1241_v6, 0.0  ;;  %v1401_v11 = vmax.f32 %v1273_v7, 0.0 }
 0x187   :  { %1722 = vst.msk [vmem:[#allocation2 + $0xf8] sm:$0xf] %vm1659_vm3, %v1593_v3  ;;  %v1306_v12 = vmax.f32 %v1178_v8, 0.0  ;;  %v1338_v13 = vmax.f32 %v1210_v9, 0.0 }
 0x188   :  { %v1497_v14 = vmin.f32 %v1369_v10, 6.0  ;;  %v1529_v15 = vmin.f32 %v1401_v11, 6.0 }
 0x189   :  { %v1434_v16 = vmin.f32 %v1306_v12, 6.0  ;;  %v1466_v17 = vmin.f32 %v1338_v13, 6.0  ;;  %v928_v18 = vpop.f32.mrf.mxu2  ;;  %v1008_v19 = vpop.f32.mrf.mxu3 }
 0x18a   :  { %v1625_v20 = vpack.c.bf16 %v1497_v14, %v1497_v14  ;;  %v1657_v21 = vpack.c.bf16 %v1529_v15, %v1529_v15  ;;  %v1110_v22 = vmul.f32 %v2741_v41, %v928_v18  ;;  %v1142_v23 = vmul.f32 %v2741_v41, %v1008_v19 }
 0x18b   :  { %v1562_v24 = vpack.c.bf16 %v1434_v16, %v1434_v16  ;;  %v1594_v40 = vpack.c.bf16 %v1466_v17, %v1466_v17 }
 0x18c   :  { %1754 = vst.msk [vmem:[#allocation2 + $0x178] sm:$0xf] %vm1659_vm3, %v1625_v20  ;;  %v1242_v25 = vadd.f32 %v2751_v43, %v1110_v22  ;;  %v1274_v26 = vadd.f32 %v2751_v43, %v1142_v23 }
 0x18d   :  { %1786 = vst.msk [vmem:[#allocation2 + $0x1f8] sm:$0xf] %vm1659_vm3, %v1657_v21 }
 0x18e   :  { %1691 = vst.msk [vmem:[#allocation2 + $0x7c] sm:$0xf] %vm1659_vm3, %v1562_v24  ;;  %v1370_v27 = vmax.f32 %v1242_v25, 0.0  ;;  %v1402_v28 = vmax.f32 %v1274_v26, 0.0 }
 0x18f   :  { %1723 = vst.msk [vmem:[#allocation2 + $0xfc] sm:$0xf] %vm1659_vm3, %v1594_v40 }
 0x190   :  { %v1498_v41 = vmin.f32 %v1370_v27, 6.0  ;;  %v1530_v29 = vmin.f32 %v1402_v28, 6.0 }
 0x192   :  { %v1626_v30 = vpack.c.bf16 %v1498_v41, %v1498_v41  ;;  %v1658_v31 = vpack.c.bf16 %v1530_v29, %v1530_v29 }
 0x194   :  { %1755 = vst.msk [vmem:[#allocation2 + $0x17c] sm:$0xf] %vm1659_vm3, %v1626_v30 }
 0x195   :  { %1787 = vst.msk [vmem:[#allocation2 + $0x1fc] sm:$0xf] %vm1659_vm3, %v1658_v31 }
 0x196   :  { %1800 = dma.vmem_to_hbm [thread:$0]  %s1793_s3, 8192, %s1795_s23, [#allocation3], %s2242_s24, %s2242_s24, %s2243_s25  }
 0x197   :  { %2238 = dma.done.wait [#allocation3], 8192  }
 0x198   :  { %2239 = vsyncadd [#allocation3], 4294959104 }
 0x199   :  { %1805 = vsyncpa [#allocation3], 1 }

</bundles_post_ra>
